<compile_context>
chip_gen: v7x
topology: tpu7x:2x2x1
jax: 0.10.0
libtpu: 0.0.40
codegen_flags: <defaults>
</compile_context>

<pallas_src>
import jax
import jax.numpy as jnp
from jax.experimental import pallas as pl
from jax.experimental.pallas import tpu as pltpu

_EPS = 1e-5   # PyTorch BatchNorm1d default eps
_LANE = 128   # lane width
_SUB = 8      # sublane width


def _round_up(v, m):
    return ((v + m - 1) // m) * m


def _pad2(a, rows, cols):
    return jnp.pad(a, ((0, rows - a.shape[0]), (0, cols - a.shape[1])))


def _bn_relu(t, gamma, beta):
    # nn.BatchNorm1d in training mode: biased batch statistics over axis 0.
    mean = jnp.mean(t, axis=0, keepdims=True)
    var = jnp.mean(jnp.square(t - mean), axis=0, keepdims=True)
    y = (t - mean) * jax.lax.rsqrt(var + _EPS) * gamma + beta
    return jnp.maximum(y, 0.0)


def _make_gpn_fused_kernel(num_gpn_layers):
    """Builds the fused forward kernel for a fixed number of GPNConv layers."""

    def kernel(*refs):
        # refs = [x, adj, pool, (w1,b1,g1,be1,w2,b2,g2,be2) * L,
        #         wp0, bp0, wpL, bpL, wout, bout, o_ref]
        x_ref, adj_ref, pool_ref = refs[0], refs[1], refs[2]
        layer_refs = refs[3:3 + 8 * num_gpn_layers]
        (wp0_ref, bp0_ref, wpL_ref, bpL_ref,
         wout_ref, bout_ref) = refs[3 + 8 * num_gpn_layers:
                                    3 + 8 * num_gpn_layers + 6]
        o_ref = refs[-1]

        # adj arrives as bf16 (exact small integers); promote once to f32 for
        # the f32 accumulation path; it stays VMEM-resident for all layers.
        adj = adj_ref[...].astype(jnp.float32)

        h0 = x_ref[...]
        h = h0
        for l in range(num_gpn_layers):
            (w1_ref, b1_ref, g1_ref, be1_ref,
             w2_ref, b2_ref, g2_ref, be2_ref) = layer_refs[8 * l: 8 * l + 8]
            # GPNConv: scatter_add(x[col], row) == adj @ h ;  out = h + agg
            agg = h + jnp.dot(adj, h, preferred_element_type=jnp.float32)
            # 2-layer MLP: linear -> BN -> ReLU -> linear
            t = jnp.dot(agg, w1_ref[...],
                        preferred_element_type=jnp.float32) + b1_ref[...]
            t = _bn_relu(t, g1_ref[...], be1_ref[...])
            t = jnp.dot(t, w2_ref[...],
                        preferred_element_type=jnp.float32) + b2_ref[...]
            # GPN-level BatchNorm + ReLU
            h = _bn_relu(t, g2_ref[...], be2_ref[...])

        # Readout: global_add_pool of hidden_rep[0] and hidden_rep[-1],
        # prediction linears, sum, ReLU, output linear.  Everything is padded
        # in the wrapper so the final store is an unmasked lane-dense vst.
        pool = pool_ref[...]
        p0 = jnp.dot(pool, h0, preferred_element_type=jnp.float32)
        pL = jnp.dot(pool, h, preferred_element_type=jnp.float32)
        s = (jnp.dot(p0, wp0_ref[...], preferred_element_type=jnp.float32)
             + bp0_ref[...]
             + jnp.dot(pL, wpL_ref[...], preferred_element_type=jnp.float32)
             + bpL_ref[...])
        s = jnp.maximum(s, 0.0)
        o_ref[...] = (jnp.dot(s, wout_ref[...],
                              preferred_element_type=jnp.float32)
                      + bout_ref[...])

    return kernel


def _vmem():
    return pl.BlockSpec(memory_space=pltpu.MemorySpace.VMEM)


def gpn_forward(x, adj, pool, params):
    """Full GPN forward, fused into a single Pallas kernel."""
    layers = params["layers"]
    num_gpn_layers = len(layers)
    assert num_gpn_layers >= 1
    N, in_dim = x.shape
    G = pool.shape[0]
    wp0, bp0 = params["pred0"]
    wpL, bpL = params["predL"]
    wout, bout = params["out"]
    hid_dim = layers[0][4].shape[1]   # out-dim of w2 (== hidden_dim)
    mid_dim = wp0.shape[1]
    out_dim = wout.shape[1]

    # Lane-dense padding: feature dims -> multiple of 128, graph rows -> 8.
    in_p = _round_up(in_dim, _LANE)
    hid_p = _round_up(hid_dim, _LANE)
    mid_p = _round_up(mid_dim, _LANE)
    out_p = _round_up(out_dim, _LANE)
    g_pad = _round_up(G, _SUB)

    x_p = _pad2(x, N, in_p)
    # bf16 adjacency (exact for small integer edge counts) halves HBM bytes
    # for the O(N^2) operand; accumulation stays f32 inside the kernel.
    adj_bf16 = adj.astype(jnp.bfloat16)
    pool_p = _pad2(pool, g_pad, N)

    flat_inputs = [x_p, adj_bf16, pool_p]
    for li, (w1, b1, g1, be1, w2, b2, g2, be2) in enumerate(layers):
        r_in = in_p if li == 0 else hid_p
        flat_inputs.extend([
            _pad2(w1, r_in, hid_p), _pad2(b1, 1, hid_p),
            _pad2(g1, 1, hid_p), _pad2(be1, 1, hid_p),
            _pad2(w2, hid_p, hid_p), _pad2(b2, 1, hid_p),
            _pad2(g2, 1, hid_p), _pad2(be2, 1, hid_p),
        ])
    flat_inputs.extend([
        _pad2(wp0, in_p, mid_p), _pad2(bp0, 1, mid_p),
        _pad2(wpL, hid_p, mid_p), _pad2(bpL, 1, mid_p),
        _pad2(wout, mid_p, out_p), _pad2(bout, 1, out_p),
    ])

    # Advisory cost estimate for the XLA scheduler (padded shapes).
    flops = 0
    prev = in_p
    for _ in range(num_gpn_layers):
        flops += 2 * N * N * prev              # adj @ h
        flops += 2 * N * prev * hid_p          # w1
        flops += 2 * N * hid_p * hid_p         # w2
        prev = hid_p
    flops += 2 * g_pad * N * (in_p + hid_p)    # pooling matmuls
    flops += 2 * g_pad * (in_p * mid_p + hid_p * mid_p + mid_p * out_p)
    transcendentals = 2 * num_gpn_layers * hid_p   # rsqrt per BN column
    bytes_accessed = sum(int(a.size) * a.dtype.itemsize for a in flat_inputs)
    bytes_accessed += g_pad * out_p * 4
    cost = pl.CostEstimate(flops=int(flops),
                           transcendentals=int(transcendentals),
                           bytes_accessed=int(bytes_accessed))

    kernel = _make_gpn_fused_kernel(num_gpn_layers)
    out_padded = pl.pallas_call(
        kernel,
        out_shape=jax.ShapeDtypeStruct((g_pad, out_p), jnp.float32),
        in_specs=[_vmem()] * len(flat_inputs),
        out_specs=_vmem(),
        compiler_params=pltpu.CompilerParams(
            vmem_limit_bytes=32 * 1024 * 1024),
        cost_estimate=cost,
    )(*flat_inputs)

    return out_padded[:G, :out_dim]


def gpn_forward_ref(x, adj, pool, params):
    """Pure-JAX reference with identical semantics (for verification)."""
    hidden_rep = [x]
    h = x
    for (w1, b1, g1, be1, w2, b2, g2, be2) in params["layers"]:
        agg = h + adj @ h
        t = _bn_relu(agg @ w1 + b1, g1, be1)
        t = t @ w2 + b2
        h = _bn_relu(t, g2, be2)
        hidden_rep.append(h)
    wp0, bp0 = params["pred0"]
    wpL, bpL = params["predL"]
    wout, bout = params["out"]
    s = (pool @ hidden_rep[0]) @ wp0 + bp0 + (pool @ hidden_rep[-1]) @ wpL + bpL
    return jnp.maximum(s, 0.0) @ wout + bout


def _linear_params(key, fan_in, fan_out):
    # Deterministic PyTorch-Linear-style init: U(-1/sqrt(fan_in), 1/sqrt(fan_in)).
    kw, kb = jax.random.split(key)
    bound = 1.0 / jnp.sqrt(float(fan_in))
    w = jax.random.uniform(kw, (fan_in, fan_out), jnp.float32, -bound, bound)
    b = jax.random.uniform(kb, (1, fan_out), jnp.float32, -bound, bound)
    return w, b


if __name__ == "__main__":
    # Small, module-consistent shapes.
    N = 16            # total nodes
    G = 2             # graphs in the batch
    input_dim = 16
    hidden_dim = 32
    output_dim = 8
    middle_dim = 32   # fixed in GPN.__init__
    num_layers = 3    # -> 2 GPNConv layers, hidden_rep has 3 entries
    # num_mlp_layers = 2 (one hidden layer inside each MLP), baked into kernel.

    key = jax.random.PRNGKey(0)
    keys = jax.random.split(key, 16)

    # Node features.
    x = jax.random.normal(keys[0], (N, input_dim), jnp.float32)

    # Deterministic edge_index: ring inside each graph (8 nodes per graph).
    nodes = jnp.arange(N)
    row = nodes
    col = (nodes + 1) % 8 + (nodes // 8) * 8
    edge_index = jnp.stack([row, col])                     # [2, E]
    # Dense adjacency so scatter_add(x[col], row) == adj @ x.
    adj = jnp.zeros((N, N), jnp.float32).at[edge_index[0], edge_index[1]].add(1.0)

    # batch_index and one-hot pooling matrix for global_add_pool.
    batch_index = jnp.concatenate([jnp.zeros(8, jnp.int32), jnp.ones(8, jnp.int32)])
    pool = jax.nn.one_hot(batch_index, G, dtype=jnp.float32).T   # [G, N]

    # Parameters (deterministic init; BN gamma=1, beta=0 as in PyTorch default).
    def bn_params(dim):
        return jnp.ones((1, dim), jnp.float32), jnp.zeros((1, dim), jnp.float32)

    layers = []
    k_idx = 1
    for layer in range(num_layers - 1):
        in_d = input_dim if layer == 0 else hidden_dim
        w1, b1 = _linear_params(keys[k_idx], in_d, hidden_dim); k_idx += 1
        g1, be1 = bn_params(hidden_dim)                      # MLP internal BN
        w2, b2 = _linear_params(keys[k_idx], hidden_dim, hidden_dim); k_idx += 1
        g2, be2 = bn_params(hidden_dim)                      # GPN-level BN
        layers.append((w1, b1, g1, be1, w2, b2, g2, be2))

    wp0, bp0 = _linear_params(keys[k_idx], input_dim, middle_dim); k_idx += 1
    wpL, bpL = _linear_params(keys[k_idx], hidden_dim, middle_dim); k_idx += 1
    wout, bout = _linear_params(keys[k_idx], middle_dim, output_dim); k_idx += 1

    params = {"layers": layers, "pred0": (wp0, bp0),
              "predL": (wpL, bpL), "out": (wout, bout)}

    out = gpn_forward(x, adj, pool, params)
    out = jax.block_until_ready(out)

    ref = gpn_forward_ref(x, adj, pool, params)
    assert out.shape == (G, output_dim)
    assert jnp.allclose(out, ref, rtol=1e-4, atol=1e-4), "mismatch vs JAX reference"

    print("KERNEL_OK")
</pallas_src>

<mosaic_0001>
module attributes {stable_mosaic.version = 11 : i64} {
  func.func @kernel(%arg0: memref<16x128xf32, #tpu.memory_space<vmem>>, %arg1: memref<16x16xbf16, #tpu.memory_space<vmem>>, %arg2: memref<8x16xf32, #tpu.memory_space<vmem>>, %arg3: memref<128x128xf32, #tpu.memory_space<vmem>>, %arg4: memref<1x128xf32, #tpu.memory_space<vmem>>, %arg5: memref<1x128xf32, #tpu.memory_space<vmem>>, %arg6: memref<1x128xf32, #tpu.memory_space<vmem>>, %arg7: memref<128x128xf32, #tpu.memory_space<vmem>>, %arg8: memref<1x128xf32, #tpu.memory_space<vmem>>, %arg9: memref<1x128xf32, #tpu.memory_space<vmem>>, %arg10: memref<1x128xf32, #tpu.memory_space<vmem>>, %arg11: memref<128x128xf32, #tpu.memory_space<vmem>>, %arg12: memref<1x128xf32, #tpu.memory_space<vmem>>, %arg13: memref<1x128xf32, #tpu.memory_space<vmem>>, %arg14: memref<1x128xf32, #tpu.memory_space<vmem>>, %arg15: memref<128x128xf32, #tpu.memory_space<vmem>>, %arg16: memref<1x128xf32, #tpu.memory_space<vmem>>, %arg17: memref<1x128xf32, #tpu.memory_space<vmem>>, %arg18: memref<1x128xf32, #tpu.memory_space<vmem>>, %arg19: memref<128x128xf32, #tpu.memory_space<vmem>>, %arg20: memref<1x128xf32, #tpu.memory_space<vmem>>, %arg21: memref<128x128xf32, #tpu.memory_space<vmem>>, %arg22: memref<1x128xf32, #tpu.memory_space<vmem>>, %arg23: memref<128x128xf32, #tpu.memory_space<vmem>>, %arg24: memref<1x128xf32, #tpu.memory_space<vmem>>, %arg25: memref<8x128xf32, #tpu.memory_space<vmem>>) attributes {dimension_semantics = [], scalar_prefetch = 0 : i64, scratch_operands = 0 : i64, tpu.core_type = #tpu.core_type<tc>} {
    %c0 = arith.constant 0 : index
    %c0_0 = arith.constant 0 : index
    %0 = vector.load %arg1[%c0, %c0_0] : memref<16x16xbf16, #tpu.memory_space<vmem>>, vector<16x16xbf16>
    %1 = arith.extf %0 : vector<16x16xbf16> to vector<16x16xf32>
    %c0_1 = arith.constant 0 : index
    %c0_2 = arith.constant 0 : index
    %2 = vector.load %arg0[%c0_1, %c0_2] : memref<16x128xf32, #tpu.memory_space<vmem>>, vector<16x128xf32>
    %cst = arith.constant dense<0.000000e+00> : vector<16x128xf32>
    %3 = tpu.matmul %1, %2, %cst {dimension_numbers = #tpu.dot_dimension_numbers<[1], [0], [0], [1], [0, 0, 1, 1], [], []>} : vector<16x16xf32>, vector<16x128xf32>, vector<16x128xf32> -> vector<16x128xf32>
    %4 = arith.addf %2, %3 : vector<16x128xf32>
    %c0_3 = arith.constant 0 : index
    %c0_4 = arith.constant 0 : index
    %5 = vector.load %arg3[%c0_3, %c0_4] : memref<128x128xf32, #tpu.memory_space<vmem>>, vector<128x128xf32>
    %cst_5 = arith.constant dense<0.000000e+00> : vector<16x128xf32>
    %6 = tpu.matmul %4, %5, %cst_5 {dimension_numbers = #tpu.dot_dimension_numbers<[1], [0], [0], [1], [0, 0, 1, 1], [], []>} : vector<16x128xf32>, vector<128x128xf32>, vector<16x128xf32> -> vector<16x128xf32>
    %c0_6 = arith.constant 0 : index
    %c0_7 = arith.constant 0 : index
    %7 = vector.load %arg4[%c0_6, %c0_7] : memref<1x128xf32, #tpu.memory_space<vmem>>, vector<1x128xf32>
    %8 = vector.broadcast %7 : vector<1x128xf32> to vector<16x128xf32>
    %9 = arith.addf %6, %8 : vector<16x128xf32>
    %c0_8 = arith.constant 0 : index
    %c0_9 = arith.constant 0 : index
    %10 = vector.load %arg5[%c0_8, %c0_9] : memref<1x128xf32, #tpu.memory_space<vmem>>, vector<1x128xf32>
    %c0_10 = arith.constant 0 : index
    %c0_11 = arith.constant 0 : index
    %11 = vector.load %arg6[%c0_10, %c0_11] : memref<1x128xf32, #tpu.memory_space<vmem>>, vector<1x128xf32>
    %cst_12 = arith.constant dense<0.000000e+00> : vector<128xf32>
    %12 = vector.multi_reduction <add>, %9, %cst_12 [0] : vector<16x128xf32> to vector<128xf32>
    %13 = vector.shape_cast %12 : vector<128xf32> to vector<1x128xf32>
    %cst_13 = arith.constant 1.600000e+01 : f32
    %14 = vector.broadcast %cst_13 : f32 to vector<1x128xf32>
    %15 = arith.divf %13, %14 : vector<1x128xf32>
    %16 = vector.broadcast %15 : vector<1x128xf32> to vector<16x128xf32>
    %17 = arith.subf %9, %16 : vector<16x128xf32>
    %18 = arith.mulf %17, %17 : vector<16x128xf32>
    %cst_14 = arith.constant dense<0.000000e+00> : vector<128xf32>
    %19 = vector.multi_reduction <add>, %18, %cst_14 [0] : vector<16x128xf32> to vector<128xf32>
    %20 = vector.shape_cast %19 : vector<128xf32> to vector<1x128xf32>
    %cst_15 = arith.constant 1.600000e+01 : f32
    %21 = vector.broadcast %cst_15 : f32 to vector<1x128xf32>
    %22 = arith.divf %20, %21 : vector<1x128xf32>
    %23 = vector.broadcast %15 : vector<1x128xf32> to vector<16x128xf32>
    %24 = arith.subf %9, %23 : vector<16x128xf32>
    %cst_16 = arith.constant 9.99999974E-6 : f32
    %25 = vector.broadcast %cst_16 : f32 to vector<1x128xf32>
    %26 = arith.addf %22, %25 : vector<1x128xf32>
    %27 = math.rsqrt %26 : vector<1x128xf32>
    %28 = vector.broadcast %27 : vector<1x128xf32> to vector<16x128xf32>
    %29 = arith.mulf %24, %28 : vector<16x128xf32>
    %30 = vector.broadcast %10 : vector<1x128xf32> to vector<16x128xf32>
    %31 = arith.mulf %29, %30 : vector<16x128xf32>
    %32 = vector.broadcast %11 : vector<1x128xf32> to vector<16x128xf32>
    %33 = arith.addf %31, %32 : vector<16x128xf32>
    %cst_17 = arith.constant 0.000000e+00 : f32
    %34 = vector.broadcast %cst_17 : f32 to vector<16x128xf32>
    %35 = arith.maximumf %33, %34 : vector<16x128xf32>
    %c0_18 = arith.constant 0 : index
    %c0_19 = arith.constant 0 : index
    %36 = vector.load %arg7[%c0_18, %c0_19] : memref<128x128xf32, #tpu.memory_space<vmem>>, vector<128x128xf32>
    %cst_20 = arith.constant dense<0.000000e+00> : vector<16x128xf32>
    %37 = tpu.matmul %35, %36, %cst_20 {dimension_numbers = #tpu.dot_dimension_numbers<[1], [0], [0], [1], [0, 0, 1, 1], [], []>} : vector<16x128xf32>, vector<128x128xf32>, vector<16x128xf32> -> vector<16x128xf32>
    %c0_21 = arith.constant 0 : index
    %c0_22 = arith.constant 0 : index
    %38 = vector.load %arg8[%c0_21, %c0_22] : memref<1x128xf32, #tpu.memory_space<vmem>>, vector<1x128xf32>
    %39 = vector.broadcast %38 : vector<1x128xf32> to vector<16x128xf32>
    %40 = arith.addf %37, %39 : vector<16x128xf32>
    %c0_23 = arith.constant 0 : index
    %c0_24 = arith.constant 0 : index
    %41 = vector.load %arg9[%c0_23, %c0_24] : memref<1x128xf32, #tpu.memory_space<vmem>>, vector<1x128xf32>
    %c0_25 = arith.constant 0 : index
    %c0_26 = arith.constant 0 : index
    %42 = vector.load %arg10[%c0_25, %c0_26] : memref<1x128xf32, #tpu.memory_space<vmem>>, vector<1x128xf32>
    %cst_27 = arith.constant dense<0.000000e+00> : vector<128xf32>
    %43 = vector.multi_reduction <add>, %40, %cst_27 [0] : vector<16x128xf32> to vector<128xf32>
    %44 = vector.shape_cast %43 : vector<128xf32> to vector<1x128xf32>
    %cst_28 = arith.constant 1.600000e+01 : f32
    %45 = vector.broadcast %cst_28 : f32 to vector<1x128xf32>
    %46 = arith.divf %44, %45 : vector<1x128xf32>
    %47 = vector.broadcast %46 : vector<1x128xf32> to vector<16x128xf32>
    %48 = arith.subf %40, %47 : vector<16x128xf32>
    %49 = arith.mulf %48, %48 : vector<16x128xf32>
    %cst_29 = arith.constant dense<0.000000e+00> : vector<128xf32>
    %50 = vector.multi_reduction <add>, %49, %cst_29 [0] : vector<16x128xf32> to vector<128xf32>
    %51 = vector.shape_cast %50 : vector<128xf32> to vector<1x128xf32>
    %cst_30 = arith.constant 1.600000e+01 : f32
    %52 = vector.broadcast %cst_30 : f32 to vector<1x128xf32>
    %53 = arith.divf %51, %52 : vector<1x128xf32>
    %54 = vector.broadcast %46 : vector<1x128xf32> to vector<16x128xf32>
    %55 = arith.subf %40, %54 : vector<16x128xf32>
    %cst_31 = arith.constant 9.99999974E-6 : f32
    %56 = vector.broadcast %cst_31 : f32 to vector<1x128xf32>
    %57 = arith.addf %53, %56 : vector<1x128xf32>
    %58 = math.rsqrt %57 : vector<1x128xf32>
    %59 = vector.broadcast %58 : vector<1x128xf32> to vector<16x128xf32>
    %60 = arith.mulf %55, %59 : vector<16x128xf32>
    %61 = vector.broadcast %41 : vector<1x128xf32> to vector<16x128xf32>
    %62 = arith.mulf %60, %61 : vector<16x128xf32>
    %63 = vector.broadcast %42 : vector<1x128xf32> to vector<16x128xf32>
    %64 = arith.addf %62, %63 : vector<16x128xf32>
    %cst_32 = arith.constant 0.000000e+00 : f32
    %65 = vector.broadcast %cst_32 : f32 to vector<16x128xf32>
    %66 = arith.maximumf %64, %65 : vector<16x128xf32>
    %cst_33 = arith.constant dense<0.000000e+00> : vector<16x128xf32>
    %67 = tpu.matmul %1, %66, %cst_33 {dimension_numbers = #tpu.dot_dimension_numbers<[1], [0], [0], [1], [0, 0, 1, 1], [], []>} : vector<16x16xf32>, vector<16x128xf32>, vector<16x128xf32> -> vector<16x128xf32>
    %68 = arith.addf %66, %67 : vector<16x128xf32>
    %c0_34 = arith.constant 0 : index
    %c0_35 = arith.constant 0 : index
    %69 = vector.load %arg11[%c0_34, %c0_35] : memref<128x128xf32, #tpu.memory_space<vmem>>, vector<128x128xf32>
    %cst_36 = arith.constant dense<0.000000e+00> : vector<16x128xf32>
    %70 = tpu.matmul %68, %69, %cst_36 {dimension_numbers = #tpu.dot_dimension_numbers<[1], [0], [0], [1], [0, 0, 1, 1], [], []>} : vector<16x128xf32>, vector<128x128xf32>, vector<16x128xf32> -> vector<16x128xf32>
    %c0_37 = arith.constant 0 : index
    %c0_38 = arith.constant 0 : index
    %71 = vector.load %arg12[%c0_37, %c0_38] : memref<1x128xf32, #tpu.memory_space<vmem>>, vector<1x128xf32>
    %72 = vector.broadcast %71 : vector<1x128xf32> to vector<16x128xf32>
    %73 = arith.addf %70, %72 : vector<16x128xf32>
    %c0_39 = arith.constant 0 : index
    %c0_40 = arith.constant 0 : index
    %74 = vector.load %arg13[%c0_39, %c0_40] : memref<1x128xf32, #tpu.memory_space<vmem>>, vector<1x128xf32>
    %c0_41 = arith.constant 0 : index
    %c0_42 = arith.constant 0 : index
    %75 = vector.load %arg14[%c0_41, %c0_42] : memref<1x128xf32, #tpu.memory_space<vmem>>, vector<1x128xf32>
    %cst_43 = arith.constant dense<0.000000e+00> : vector<128xf32>
    %76 = vector.multi_reduction <add>, %73, %cst_43 [0] : vector<16x128xf32> to vector<128xf32>
    %77 = vector.shape_cast %76 : vector<128xf32> to vector<1x128xf32>
    %cst_44 = arith.constant 1.600000e+01 : f32
    %78 = vector.broadcast %cst_44 : f32 to vector<1x128xf32>
    %79 = arith.divf %77, %78 : vector<1x128xf32>
    %80 = vector.broadcast %79 : vector<1x128xf32> to vector<16x128xf32>
    %81 = arith.subf %73, %80 : vector<16x128xf32>
    %82 = arith.mulf %81, %81 : vector<16x128xf32>
    %cst_45 = arith.constant dense<0.000000e+00> : vector<128xf32>
    %83 = vector.multi_reduction <add>, %82, %cst_45 [0] : vector<16x128xf32> to vector<128xf32>
    %84 = vector.shape_cast %83 : vector<128xf32> to vector<1x128xf32>
    %cst_46 = arith.constant 1.600000e+01 : f32
    %85 = vector.broadcast %cst_46 : f32 to vector<1x128xf32>
    %86 = arith.divf %84, %85 : vector<1x128xf32>
    %87 = vector.broadcast %79 : vector<1x128xf32> to vector<16x128xf32>
    %88 = arith.subf %73, %87 : vector<16x128xf32>
    %cst_47 = arith.constant 9.99999974E-6 : f32
    %89 = vector.broadcast %cst_47 : f32 to vector<1x128xf32>
    %90 = arith.addf %86, %89 : vector<1x128xf32>
    %91 = math.rsqrt %90 : vector<1x128xf32>
    %92 = vector.broadcast %91 : vector<1x128xf32> to vector<16x128xf32>
    %93 = arith.mulf %88, %92 : vector<16x128xf32>
    %94 = vector.broadcast %74 : vector<1x128xf32> to vector<16x128xf32>
    %95 = arith.mulf %93, %94 : vector<16x128xf32>
    %96 = vector.broadcast %75 : vector<1x128xf32> to vector<16x128xf32>
    %97 = arith.addf %95, %96 : vector<16x128xf32>
    %cst_48 = arith.constant 0.000000e+00 : f32
    %98 = vector.broadcast %cst_48 : f32 to vector<16x128xf32>
    %99 = arith.maximumf %97, %98 : vector<16x128xf32>
    %c0_49 = arith.constant 0 : index
    %c0_50 = arith.constant 0 : index
    %100 = vector.load %arg15[%c0_49, %c0_50] : memref<128x128xf32, #tpu.memory_space<vmem>>, vector<128x128xf32>
    %cst_51 = arith.constant dense<0.000000e+00> : vector<16x128xf32>
    %101 = tpu.matmul %99, %100, %cst_51 {dimension_numbers = #tpu.dot_dimension_numbers<[1], [0], [0], [1], [0, 0, 1, 1], [], []>} : vector<16x128xf32>, vector<128x128xf32>, vector<16x128xf32> -> vector<16x128xf32>
    %c0_52 = arith.constant 0 : index
    %c0_53 = arith.constant 0 : index
    %102 = vector.load %arg16[%c0_52, %c0_53] : memref<1x128xf32, #tpu.memory_space<vmem>>, vector<1x128xf32>
    %103 = vector.broadcast %102 : vector<1x128xf32> to vector<16x128xf32>
    %104 = arith.addf %101, %103 : vector<16x128xf32>
    %c0_54 = arith.constant 0 : index
    %c0_55 = arith.constant 0 : index
    %105 = vector.load %arg17[%c0_54, %c0_55] : memref<1x128xf32, #tpu.memory_space<vmem>>, vector<1x128xf32>
    %c0_56 = arith.constant 0 : index
    %c0_57 = arith.constant 0 : index
    %106 = vector.load %arg18[%c0_56, %c0_57] : memref<1x128xf32, #tpu.memory_space<vmem>>, vector<1x128xf32>
    %cst_58 = arith.constant dense<0.000000e+00> : vector<128xf32>
    %107 = vector.multi_reduction <add>, %104, %cst_58 [0] : vector<16x128xf32> to vector<128xf32>
    %108 = vector.shape_cast %107 : vector<128xf32> to vector<1x128xf32>
    %cst_59 = arith.constant 1.600000e+01 : f32
    %109 = vector.broadcast %cst_59 : f32 to vector<1x128xf32>
    %110 = arith.divf %108, %109 : vector<1x128xf32>
    %111 = vector.broadcast %110 : vector<1x128xf32> to vector<16x128xf32>
    %112 = arith.subf %104, %111 : vector<16x128xf32>
    %113 = arith.mulf %112, %112 : vector<16x128xf32>
    %cst_60 = arith.constant dense<0.000000e+00> : vector<128xf32>
    %114 = vector.multi_reduction <add>, %113, %cst_60 [0] : vector<16x128xf32> to vector<128xf32>
    %115 = vector.shape_cast %114 : vector<128xf32> to vector<1x128xf32>
    %cst_61 = arith.constant 1.600000e+01 : f32
    %116 = vector.broadcast %cst_61 : f32 to vector<1x128xf32>
    %117 = arith.divf %115, %116 : vector<1x128xf32>
    %118 = vector.broadcast %110 : vector<1x128xf32> to vector<16x128xf32>
    %119 = arith.subf %104, %118 : vector<16x128xf32>
    %cst_62 = arith.constant 9.99999974E-6 : f32
    %120 = vector.broadcast %cst_62 : f32 to vector<1x128xf32>
    %121 = arith.addf %117, %120 : vector<1x128xf32>
    %122 = math.rsqrt %121 : vector<1x128xf32>
    %123 = vector.broadcast %122 : vector<1x128xf32> to vector<16x128xf32>
    %124 = arith.mulf %119, %123 : vector<16x128xf32>
    %125 = vector.broadcast %105 : vector<1x128xf32> to vector<16x128xf32>
    %126 = arith.mulf %124, %125 : vector<16x128xf32>
    %127 = vector.broadcast %106 : vector<1x128xf32> to vector<16x128xf32>
    %128 = arith.addf %126, %127 : vector<16x128xf32>
    %cst_63 = arith.constant 0.000000e+00 : f32
    %129 = vector.broadcast %cst_63 : f32 to vector<16x128xf32>
    %130 = arith.maximumf %128, %129 : vector<16x128xf32>
    %c0_64 = arith.constant 0 : index
    %c0_65 = arith.constant 0 : index
    %131 = vector.load %arg2[%c0_64, %c0_65] : memref<8x16xf32, #tpu.memory_space<vmem>>, vector<8x16xf32>
    %cst_66 = arith.constant dense<0.000000e+00> : vector<8x128xf32>
    %132 = tpu.matmul %131, %2, %cst_66 {dimension_numbers = #tpu.dot_dimension_numbers<[1], [0], [0], [1], [0, 0, 1, 1], [], []>} : vector<8x16xf32>, vector<16x128xf32>, vector<8x128xf32> -> vector<8x128xf32>
    %cst_67 = arith.constant dense<0.000000e+00> : vector<8x128xf32>
    %133 = tpu.matmul %131, %130, %cst_67 {dimension_numbers = #tpu.dot_dimension_numbers<[1], [0], [0], [1], [0, 0, 1, 1], [], []>} : vector<8x16xf32>, vector<16x128xf32>, vector<8x128xf32> -> vector<8x128xf32>
    %c0_68 = arith.constant 0 : index
    %c0_69 = arith.constant 0 : index
    %134 = vector.load %arg19[%c0_68, %c0_69] : memref<128x128xf32, #tpu.memory_space<vmem>>, vector<128x128xf32>
    %cst_70 = arith.constant dense<0.000000e+00> : vector<8x128xf32>
    %135 = tpu.matmul %132, %134, %cst_70 {dimension_numbers = #tpu.dot_dimension_numbers<[1], [0], [0], [1], [0, 0, 1, 1], [], []>} : vector<8x128xf32>, vector<128x128xf32>, vector<8x128xf32> -> vector<8x128xf32>
    %c0_71 = arith.constant 0 : index
    %c0_72 = arith.constant 0 : index
    %136 = vector.load %arg20[%c0_71, %c0_72] : memref<1x128xf32, #tpu.memory_space<vmem>>, vector<1x128xf32>
    %137 = vector.broadcast %136 : vector<1x128xf32> to vector<8x128xf32>
    %138 = arith.addf %135, %137 : vector<8x128xf32>
    %c0_73 = arith.constant 0 : index
    %c0_74 = arith.constant 0 : index
    %139 = vector.load %arg21[%c0_73, %c0_74] : memref<128x128xf32, #tpu.memory_space<vmem>>, vector<128x128xf32>
    %cst_75 = arith.constant dense<0.000000e+00> : vector<8x128xf32>
    %140 = tpu.matmul %133, %139, %cst_75 {dimension_numbers = #tpu.dot_dimension_numbers<[1], [0], [0], [1], [0, 0, 1, 1], [], []>} : vector<8x128xf32>, vector<128x128xf32>, vector<8x128xf32> -> vector<8x128xf32>
    %141 = arith.addf %138, %140 : vector<8x128xf32>
    %c0_76 = arith.constant 0 : index
    %c0_77 = arith.constant 0 : index
    %142 = vector.load %arg22[%c0_76, %c0_77] : memref<1x128xf32, #tpu.memory_space<vmem>>, vector<1x128xf32>
    %143 = vector.broadcast %142 : vector<1x128xf32> to vector<8x128xf32>
    %144 = arith.addf %141, %143 : vector<8x128xf32>
    %cst_78 = arith.constant 0.000000e+00 : f32
    %145 = vector.broadcast %cst_78 : f32 to vector<8x128xf32>
    %146 = arith.maximumf %144, %145 : vector<8x128xf32>
    %c0_79 = arith.constant 0 : index
    %c0_80 = arith.constant 0 : index
    %147 = vector.load %arg23[%c0_79, %c0_80] : memref<128x128xf32, #tpu.memory_space<vmem>>, vector<128x128xf32>
    %cst_81 = arith.constant dense<0.000000e+00> : vector<8x128xf32>
    %148 = tpu.matmul %146, %147, %cst_81 {dimension_numbers = #tpu.dot_dimension_numbers<[1], [0], [0], [1], [0, 0, 1, 1], [], []>} : vector<8x128xf32>, vector<128x128xf32>, vector<8x128xf32> -> vector<8x128xf32>
    %c0_82 = arith.constant 0 : index
    %c0_83 = arith.constant 0 : index
    %149 = vector.load %arg24[%c0_82, %c0_83] : memref<1x128xf32, #tpu.memory_space<vmem>>, vector<1x128xf32>
    %150 = vector.broadcast %149 : vector<1x128xf32> to vector<8x128xf32>
    %151 = arith.addf %148, %150 : vector<8x128xf32>
    %c0_84 = arith.constant 0 : index
    %c0_85 = arith.constant 0 : index
    %152 = vector.load %arg25[%c0_84, %c0_85] : memref<8x128xf32, #tpu.memory_space<vmem>>, vector<8x128xf32>
    tpu.vector_store %arg25[%c0_84, %c0_85], %151 {strides = array<i32>} : memref<8x128xf32, #tpu.memory_space<vmem>>, vector<8x128xf32>,
    return
  }
}

</mosaic_0001>

<bundles_post_ra>
// kernel: tpu_custom_call.1
= control target key start
LH: loop header
LB: loop body
LE: loop exit
PB: predicated region body
PF: predicated region fallthrough
CT: control target
= control target key end

     0   :  { %s2737_s0 = inlined_call_operand.hbm [shape: f32[16,128], index: 0, kind: input, shape index: {}]   ;;  %s2738_s1 = inlined_call_operand.hbm [shape: bf16[16,16], index: 1, kind: input, shape index: {}]   ;;  %s2739_s2 = inlined_call_operand.hbm [shape: f32[8,16], index: 2, kind: input, shape index: {}]   ;;  %s2740_s3 = inlined_call_operand.hbm [shape: f32[128,128], index: 3, kind: input, shape index: {}]   ;;  %s2741_s4 = inlined_call_operand.vmem [shape: f32[1,128], index: 4, kind: input, shape index: {}]   ;;  %s2742_s5 = inlined_call_operand.vmem [shape: f32[1,128], index: 5, kind: input, shape index: {}]   ;;  %s2743_s6 = inlined_call_operand.vmem [shape: f32[1,128], index: 6, kind: input, shape index: {}]   ;;  %s2744_s7 = inlined_call_operand.hbm [shape: f32[128,128], index: 7, kind: input, shape index: {}]   ;;  %s2745_s8 = inlined_call_operand.vmem [shape: f32[1,128], index: 8, kind: input, shape index: {}]   ;;  %s2746_s9 = inlined_call_operand.vmem [shape: f32[1,128], index: 9, kind: input, shape index: {}]   ;;  %s2747_s10 = inlined_call_operand.vmem [shape: f32[1,128], index: 10, kind: input, shape index: {}]   ;;  %s2748_s11 = inlined_call_operand.hbm [shape: f32[128,128], index: 11, kind: input, shape index: {}]   ;;  %s2749_s12 = inlined_call_operand.vmem [shape: f32[1,128], index: 12, kind: input, shape index: {}]   ;;  %s2750_s13 = inlined_call_operand.vmem [shape: f32[1,128], index: 13, kind: input, shape index: {}]   ;;  %s2751_s14 = inlined_call_operand.vmem [shape: f32[1,128], index: 14, kind: input, shape index: {}]   ;;  %s2752_s15 = inlined_call_operand.hbm [shape: f32[128,128], index: 15, kind: input, shape index: {}]   ;;  %s2753_s16 = inlined_call_operand.vmem [shape: f32[1,128], index: 16, kind: input, shape index: {}]   ;;  %s2754_s17 = inlined_call_operand.vmem [shape: f32[1,128], index: 17, kind: input, shape index: {}]   ;;  %s2755_s18 = inlined_call_operand.vmem [shape: f32[1,128], index: 18, kind: input, shape index: {}]   ;;  %s2756_s19 = inlined_call_operand.hbm [shape: f32[128,128], index: 19, kind: input, shape index: {}]   ;;  %s2757_s20 = inlined_call_operand.vmem [shape: f32[1,128], index: 20, kind: input, shape index: {}]   ;;  %s2758_s21 = inlined_call_operand.hbm [shape: f32[128,128], index: 21, kind: input, shape index: {}]   ;;  %s2759_s22 = inlined_call_operand.vmem [shape: f32[1,128], index: 22, kind: input, shape index: {}]   ;;  %s2760_s23 = inlined_call_operand.hbm [shape: f32[128,128], index: 23, kind: input, shape index: {}]   ;;  %s2761_s24 = inlined_call_operand.vmem [shape: f32[1,128], index: 24, kind: input, shape index: {}]   ;;  %s2762_s25 = inlined_call_operand.hbm [shape: f32[8,128], index: 25, kind: output, shape index: {}]  }
   0x1   :  { %2769 = sst [smem:[#allocation27_spill]] %s2737_s0 }
   0x2   :  { %2770 = sst [smem:[#allocation28_spill]] %s2738_s1 }
   0x3   :  { %2771 = sst [smem:[#allocation29_spill]] %s2739_s2 }
   0x4   :  { %2772 = sst [smem:[#allocation30_spill]] %s2740_s3 }
   0x5   :  { %2773 = sst [smem:[#allocation31_spill]] %s2741_s4 }
   0x6   :  { %2774 = sst [smem:[#allocation32_spill]] %s2742_s5 }
   0x7   :  { %2775 = sst [smem:[#allocation33_spill]] %s2743_s6 }
   0x8   :  { %2776 = sst [smem:[#allocation34_spill]] %s2744_s7 }
   0x9   :  { %2777 = sst [smem:[#allocation35_spill]] %s2745_s8 }
   0xa   :  { %2778 = sst [smem:[#allocation36_spill]] %s2746_s9 }
   0xb   :  { %2779 = sst [smem:[#allocation37_spill]] %s2759_s22 }
   0xc   :  { %2780 = sst [smem:[#allocation38_spill]] %s2761_s24 }
   0xd   :  { %2781 = sst [smem:[#allocation39_spill]] %s2762_s25 }
   0xe   :  { %30 = vsyncpa [#allocation3], 0 }
   0xf   :  { %31 = vsyncpa [#allocation6], 0 }
  0x10   :  { %32 = vsyncpa [#allocation9], 0 }
  0x11   :  { %33 = vsyncpa [#allocation12], 0 }
  0x12   :  { %34 = vsyncpa [#allocation15], 0 }
  0x13   :  { %35 = vsyncpa [#allocation18], 0 }
  0x14   :  { %36 = vsyncpa [#allocation4], 0  ;;  %s2329_s29 = smov [#allocation5]   ;;  %s2782_s7 = sld [smem:[#allocation28_spill]] }
  0x15   :  { %s54_s2 = sshll.u32 %s2329_s29, 4  ;;  %s55_s2 = int_to_ptr.vmem [resolvable:$true] %s54_s2 }
  0x1a   :  { %s2073_s3 = scalar_lea.hbm %s2782_s7, 128 }
  0x1b   :  { %p2074_p0 = scmp.ne.s32.totalorder %s2782_s7, %s2073_s3  ;;  %p2077_p1 = scmp.lt.u32.totalorder %s2073_s3, %s2782_s7 }
  0x1d   :  { %p2079_p2 = pnand %p2077_p1, %p2074_p0 }
  0x1f   :  { %2082 = shalt.err (!%p2079_p2)
}
  0x20   :  { %s2083_s4 = scalar_lea.vmem %s55_s2, 128  ;;  %p2088_p4 = scmp.lt.s32.totalorder %s55_s2, %s55_s2 }
  0x21   :  { %p2084_p3 = scmp.ne.s32.totalorder %s55_s2, %s2083_s4  ;;  %p2089_p5 = scmp.lt.s32.totalorder %s2083_s4, %s2083_s4 }
  0x23   :  { %p2090_p6 = por %p2089_p5, %p2088_p4 }
  0x25   :  { %p2091_p7 = pnand %p2090_p6, %p2084_p3 }
  0x27   :  { %2094 = shalt.err (!%p2091_p7)
}
  0x28   :  { %s2330_s28 = smov 64   ;;  %s2331_s9 = smov 4  }
  0x29   :  { %60 = dma.hbm_to_vmem [thread:$0]  %s2782_s7, 128, %s55_s2, [#allocation6], %s2330_s28, %s2330_s28, %s2331_s9  }
  0x2a   :  { %s2332_s29 = smov [#allocation8]   ;;  %s2333_s30 = smov [#allocation11]  }
  0x2b   :  { %s76_s6 = sshll.u32 %s2332_s29, 4  ;;  %s112_s3 = sshll.u32 %s2333_s30, 4  ;;  %s77_s6 = int_to_ptr.vmem [resolvable:$true] %s76_s6  ;;  %s113_s3 = int_to_ptr.vmem [resolvable:$true] %s112_s3 }
  0x2c   :  { %s2783_s8 = sld [smem:[#allocation30_spill]] }
  0x32   :  { %s2095_s27 = scalar_lea.hbm %s2783_s8, 2048 }
  0x33   :  { %p2096_p8 = scmp.ne.s32.totalorder %s2783_s8, %s2095_s27  ;;  %p2099_p9 = scmp.lt.u32.totalorder %s2095_s27, %s2783_s8 }
  0x35   :  { %p2101_p10 = pnand %p2099_p9, %p2096_p8 }
  0x37   :  { %2104 = shalt.err (!%p2101_p10)
}
  0x38   :  { %s2105_s2 = scalar_lea.vmem %s77_s6, 2048  ;;  %p2110_p12 = scmp.lt.s32.totalorder %s77_s6, %s77_s6 }
  0x39   :  { %p2106_p11 = scmp.ne.s32.totalorder %s77_s6, %s2105_s2  ;;  %p2111_p13 = scmp.lt.s32.totalorder %s2105_s2, %s2105_s2 }
  0x3b   :  { %p2112_p0 = por %p2111_p13, %p2110_p12 }
  0x3d   :  { %p2113_p1 = pnand %p2112_p0, %p2106_p11 }
  0x3f   :  { %2116 = shalt.err (!%p2113_p1)
}
  0x40   :  { %s2334_s7 = smov 128   ;;  %s2335_s28 = smov 8  }
  0x41   :  { %82 = dma.hbm_to_vmem [thread:$0]  %s2783_s8, 2048, %s77_s6, [#allocation9], %s2334_s7, %s2334_s7, %s2335_s28  }
  0x42   :  { %s2117_s5 = scalar_lea.hbm %s2748_s11, 2048 }
  0x43   :  { %p2118_p2 = scmp.ne.s32.totalorder %s2748_s11, %s2117_s5  ;;  %p2121_p3 = scmp.lt.u32.totalorder %s2117_s5, %s2748_s11 }
  0x45   :  { %p2123_p4 = pnand %p2121_p3, %p2118_p2 }
  0x47   :  { %2126 = shalt.err (!%p2123_p4)
}
  0x48   :  { %s2127_s1 = scalar_lea.vmem %s113_s3, 2048  ;;  %p2132_p6 = scmp.lt.s32.totalorder %s113_s3, %s113_s3 }
  0x49   :  { %p2128_p5 = scmp.ne.s32.totalorder %s113_s3, %s2127_s1  ;;  %p2133_p7 = scmp.lt.s32.totalorder %s2127_s1, %s2127_s1 }
  0x4b   :  { %p2134_p8 = por %p2133_p7, %p2132_p6 }
  0x4d   :  { %p2135_p9 = pnand %p2134_p8, %p2128_p5 }
  0x4f   :  { %2138 = shalt.err (!%p2135_p9)
}
  0x50   :  { %118 = dma.hbm_to_vmem [thread:$0]  %s2748_s11, 2048, %s113_s3, [#allocation12], %s2334_s7, %s2334_s7, %s2335_s28  }
  0x51   :  { %s2336_s27 = smov [#allocation14]   ;;  %s2337_s2 = smov [#allocation2]  }
  0x52   :  { %s148_s4 = sshll.u32 %s2336_s27, 4  ;;  %s42_s25 = sshll.u32 %s2337_s2, 4  ;;  %s149_s4 = int_to_ptr.vmem [resolvable:$true] %s148_s4  ;;  %s43_s25 = int_to_ptr.vmem [resolvable:$true] %s42_s25 }
  0x53   :  { %s2139_s24 = scalar_lea.hbm %s2756_s19, 2048 }
  0x54   :  { %p2140_p10 = scmp.ne.s32.totalorder %s2756_s19, %s2139_s24  ;;  %p2143_p11 = scmp.lt.u32.totalorder %s2139_s24, %s2756_s19 }
  0x56   :  { %p2145_p12 = pnand %p2143_p11, %p2140_p10 }
  0x58   :  { %2148 = shalt.err (!%p2145_p12)
}
  0x59   :  { %s2149_s11 = scalar_lea.vmem %s149_s4, 2048  ;;  %p2154_p0 = scmp.lt.s32.totalorder %s149_s4, %s149_s4 }
  0x5a   :  { %p2150_p13 = scmp.ne.s32.totalorder %s149_s4, %s2149_s11  ;;  %p2155_p1 = scmp.lt.s32.totalorder %s2149_s11, %s2149_s11 }
  0x5c   :  { %p2156_p2 = por %p2155_p1, %p2154_p0 }
  0x5e   :  { %p2157_p3 = pnand %p2156_p2, %p2150_p13 }
  0x60   :  { %2160 = shalt.err (!%p2157_p3)
}
  0x61   :  { %154 = dma.hbm_to_vmem [thread:$0]  %s2756_s19, 2048, %s149_s4, [#allocation15], %s2334_s7, %s2334_s7, %s2335_s28  }
  0x62   :  { %s2784_s8 = sld [smem:[#allocation27_spill]] }
  0x68   :  { %s2161_s27 = scalar_lea.hbm %s2784_s8, 256 }
  0x69   :  { %p2162_p4 = scmp.ne.s32.totalorder %s2784_s8, %s2161_s27  ;;  %p2165_p5 = scmp.lt.u32.totalorder %s2161_s27, %s2784_s8 }
  0x6b   :  { %p2167_p6 = pnand %p2165_p5, %p2162_p4 }
  0x6d   :  { %2170 = shalt.err (!%p2167_p6)
}
  0x6e   :  { %s2171_s5 = scalar_lea.vmem %s43_s25, 256  ;;  %p2176_p8 = scmp.lt.s32.totalorder %s43_s25, %s43_s25 }
  0x6f   :  { %p2172_p7 = scmp.ne.s32.totalorder %s43_s25, %s2171_s5  ;;  %p2177_p9 = scmp.lt.s32.totalorder %s2171_s5, %s2171_s5 }
  0x71   :  { %p2178_p10 = por %p2177_p9, %p2176_p8 }
  0x73   :  { %p2179_p11 = pnand %p2178_p10, %p2172_p7 }
  0x75   :  { %2182 = shalt.err (!%p2179_p11)
}
  0x76   :  { %48 = dma.hbm_to_vmem [thread:$0]  %s2784_s8, 256, %s43_s25, [#allocation3], %s2334_s7, %s2334_s7, %s2335_s28  }
  0x77   :  { %s2338_s0 = smov [#allocation7]   ;;  %s2339_s30 = smov [#allocation10]  }
  0x78   :  { %s67_s29 = sshll.u32 %s2338_s0, 4  ;;  %s94_s11 = sshll.u32 %s2339_s30, 4  ;;  %s68_s29 = int_to_ptr.vmem [resolvable:$true] %s67_s29  ;;  %s95_s11 = int_to_ptr.vmem [resolvable:$true] %s94_s11 }
  0x79   :  { %s2785_s1 = sld [smem:[#allocation29_spill]] }
  0x7f   :  { %s2183_s6 = scalar_lea.hbm %s2785_s1, 128 }
  0x80   :  { %p2184_p12 = scmp.ne.s32.totalorder %s2785_s1, %s2183_s6  ;;  %p2187_p13 = scmp.lt.u32.totalorder %s2183_s6, %s2785_s1 }
  0x82   :  { %p2189_p0 = pnand %p2187_p13, %p2184_p12 }
  0x84   :  { %2192 = shalt.err (!%p2189_p0)
}
  0x85   :  { %s2193_s25 = scalar_lea.vmem %s68_s29, 128  ;;  %p2198_p2 = scmp.lt.s32.totalorder %s68_s29, %s68_s29 }
  0x86   :  { %p2194_p1 = scmp.ne.s32.totalorder %s68_s29, %s2193_s25  ;;  %p2199_p3 = scmp.lt.s32.totalorder %s2193_s25, %s2193_s25 }
  0x88   :  { %p2200_p4 = por %p2199_p3, %p2198_p2 }
  0x8a   :  { %p2201_p5 = pnand %p2200_p4, %p2194_p1 }
  0x8c   :  { %2204 = shalt.err (!%p2201_p5)
}
  0x8d   :  { %70 = dma.hbm_to_vmem [thread:$0]  %s2785_s1, 128, %s68_s29, [#allocation6]  }
  0x8e   :  { %s2786_s4 = sld [smem:[#allocation34_spill]] }
  0x94   :  { %s2205_s0 = scalar_lea.hbm %s2786_s4, 2048 }
  0x95   :  { %p2206_p6 = scmp.ne.s32.totalorder %s2786_s4, %s2205_s0  ;;  %p2209_p7 = scmp.lt.u32.totalorder %s2205_s0, %s2786_s4 }
  0x97   :  { %p2211_p8 = pnand %p2209_p7, %p2206_p6 }
  0x99   :  { %2214 = shalt.err (!%p2211_p8)
}
  0x9a   :  { %s2215_s27 = scalar_lea.vmem %s95_s11, 2048  ;;  %p2220_p10 = scmp.lt.s32.totalorder %s95_s11, %s95_s11 }
  0x9b   :  { %p2216_p9 = scmp.ne.s32.totalorder %s95_s11, %s2215_s27  ;;  %p2221_p11 = scmp.lt.s32.totalorder %s2215_s27, %s2215_s27 }
  0x9d   :  { %p2222_p12 = por %p2221_p11, %p2220_p10 }
  0x9f   :  { %p2223_p13 = pnand %p2222_p12, %p2216_p9 }
  0xa1   :  { %2226 = shalt.err (!%p2223_p13)
}
  0xa2   :  { %100 = dma.hbm_to_vmem [thread:$0]  %s2786_s4, 2048, %s95_s11, [#allocation9], %s2334_s7, %s2334_s7, %s2335_s28  }
  0xa3   :  { %s2340_s2 = smov [#allocation13]   ;;  %s2341_s22 = smov [#allocation16]  }
  0xa4   :  { %s130_s9 = sshll.u32 %s2340_s2, 4  ;;  %s162_s25 = sshll.u32 %s2341_s22, 4  ;;  %s131_s9 = int_to_ptr.vmem [resolvable:$true] %s130_s9  ;;  %s163_s25 = int_to_ptr.vmem [resolvable:$true] %s162_s25 }
  0xa5   :  { %s2227_s5 = scalar_lea.hbm %s2752_s15, 2048 }
  0xa6   :  { %p2228_p0 = scmp.ne.s32.totalorder %s2752_s15, %s2227_s5  ;;  %p2231_p1 = scmp.lt.u32.totalorder %s2227_s5, %s2752_s15 }
  0xa8   :  { %p2233_p2 = pnand %p2231_p1, %p2228_p0 }
  0xaa   :  { %2236 = shalt.err (!%p2233_p2)
}
  0xab   :  { %s2237_s11 = scalar_lea.vmem %s131_s9, 2048  ;;  %p2242_p4 = scmp.lt.s32.totalorder %s131_s9, %s131_s9 }
  0xac   :  { %p2238_p3 = scmp.ne.s32.totalorder %s131_s9, %s2237_s11  ;;  %p2243_p5 = scmp.lt.s32.totalorder %s2237_s11, %s2237_s11 }
  0xae   :  { %p2244_p6 = por %p2243_p5, %p2242_p4 }
  0xb0   :  { %p2245_p7 = pnand %p2244_p6, %p2238_p3 }
  0xb2   :  { %2248 = shalt.err (!%p2245_p7)
}
  0xb3   :  { %136 = dma.hbm_to_vmem [thread:$0]  %s2752_s15, 2048, %s131_s9, [#allocation12], %s2334_s7, %s2334_s7, %s2335_s28  }
  0xb4   :  { %s2249_s29 = scalar_lea.hbm %s2758_s21, 2048 }
  0xb5   :  { %p2250_p8 = scmp.ne.s32.totalorder %s2758_s21, %s2249_s29  ;;  %p2253_p9 = scmp.lt.u32.totalorder %s2249_s29, %s2758_s21 }
  0xb7   :  { %p2255_p10 = pnand %p2253_p9, %p2250_p8 }
  0xb9   :  { %2258 = shalt.err (!%p2255_p10)
}
  0xba   :  { %s2259_s24 = scalar_lea.vmem %s163_s25, 2048  ;;  %p2264_p12 = scmp.lt.s32.totalorder %s163_s25, %s163_s25 }
  0xbb   :  { %p2260_p11 = scmp.ne.s32.totalorder %s163_s25, %s2259_s24  ;;  %p2265_p13 = scmp.lt.s32.totalorder %s2259_s24, %s2259_s24 }
  0xbd   :  { %p2266_p0 = por %p2265_p13, %p2264_p12 }
  0xbf   :  { %p2267_p1 = pnand %p2266_p0, %p2260_p11 }
  0xc1   :  { %2270 = shalt.err (!%p2267_p1)
}
  0xc2   :  { %168 = dma.hbm_to_vmem [thread:$0]  %s2758_s21, 2048, %s163_s25, [#allocation15], %s2334_s7, %s2334_s7, %s2335_s28  }
  0xc3   :  { %s2342_s5 = smov [#allocation17]   ;;  %s2271_s3 = scalar_lea.hbm %s2760_s23, 2048 }
  0xc4   :  { %s176_s19 = sshll.u32 %s2342_s5, 4  ;;  %p2272_p2 = scmp.ne.s32.totalorder %s2760_s23, %s2271_s3  ;;  %s177_s19 = int_to_ptr.vmem [resolvable:$true] %s176_s19 }
  0xc5   :  { %p2275_p3 = scmp.lt.u32.totalorder %s2271_s3, %s2760_s23 }
  0xc7   :  { %p2277_p4 = pnand %p2275_p3, %p2272_p2 }
  0xc9   :  { %2280 = shalt.err (!%p2277_p4)
}
  0xca   :  { %s2281_s27 = scalar_lea.vmem %s177_s19, 2048  ;;  %p2286_p6 = scmp.lt.s32.totalorder %s177_s19, %s177_s19 }
  0xcb   :  { %p2282_p5 = scmp.ne.s32.totalorder %s177_s19, %s2281_s27  ;;  %p2287_p7 = scmp.lt.s32.totalorder %s2281_s27, %s2281_s27 }
  0xcd   :  { %p2288_p8 = por %p2287_p7, %p2286_p6 }
  0xcf   :  { %p2289_p9 = pnand %p2288_p8, %p2282_p5 }
  0xd1   :  { %2292 = shalt.err (!%p2289_p9)
}
  0xd2   :  { %182 = dma.hbm_to_vmem [thread:$0]  %s2760_s23, 2048, %s177_s19, [#allocation18], %s2334_s7, %s2334_s7, %s2335_s28  }
  0xd3   :  { %2315 = dma.done.wait [#allocation3], 256  }
  0xd4   :  { %2316 = vsyncadd [#allocation3], 4294967040 }
  0xd5   :  { %2317 = dma.done.wait [#allocation6], 256  }
  0xd6   :  { %2318 = vsyncadd [#allocation6], 4294967040 }
  0xd7   :  { %2319 = dma.done.wait [#allocation9], 4096  }
  0xd8   :  { %2320 = vsyncadd [#allocation9], 4294963200 }
  0xd9   :  { %2321 = dma.done.wait [#allocation12], 4096  }
  0xda   :  { %2322 = vsyncadd [#allocation12], 4294963200 }
  0xdb   :  { %2323 = dma.done.wait [#allocation15], 4096  }
  0xdc   :  { %2324 = vsyncadd [#allocation15], 4294963200 }
  0xdd   :  { %2325 = dma.done.wait [#allocation18], 2048  }
  0xde   :  { %2326 = vsyncadd [#allocation18], 4294965248  ;;  %v219_v0 = vld [vmem:[#allocation2] sm:$0xff]  ;;  %v220_v1 = vld [vmem:[#allocation2 + $0x8] sm:$0xff]  ;;  %vm221_vm0 = vcmask 130048   ;;  %s2787_s28 = sld [smem:[#allocation31_spill]] }
  0xdf   :  { %v2621_v2 = vld [vmem:[#allocation5] sm:$0xff]   ;;  %v2623_v3 = vpack.c.bf16 %v220_v1, %v219_v0  ;;  %v305_v5 = vld [vmem:[#allocation8] sm:$0xff]  ;;  %v306_v6 = vld [vmem:[#allocation8 + $0x8] sm:$0xff]  ;;  %s2788_s2 = sld [smem:[#allocation32_spill]]  ;;  %s2789_s24 = sld [smem:[#allocation33_spill]]  ;;  %vm2344_vm1 = vmmov 0  }
  0xe0   :  { %v1421_v4 = vunpack.c.l.bf16 %v2621_v2  ;;  %v1837_v7 = vpack.c.bf16 %v306_v6, %v305_v5  ;;  %v307_v8 = vld [vmem:[#allocation8 + $0x10] sm:$0xff]  ;;  %v308_v9 = vld [vmem:[#allocation8 + $0x18] sm:$0xff]  ;;  %v1422_v10 = vunpack.c.h.bf16 %v2621_v2  ;;  %v309_v12 = vld [vmem:[#allocation8 + $0x20] sm:$0xff]  ;;  %s2790_s5 = sld [smem:[#allocation35_spill]]  ;;  %s2791_s30 = sld [smem:[#allocation36_spill]] }
  0xe1   :  { %1834 = vmatprep.subr.bf16.mxu1 %v2623_v3  ;;  %v1841_v11 = vpack.c.bf16 %v308_v9, %v307_v8  ;;  %v310_v13 = vld [vmem:[#allocation8 + $0x28] sm:$0xff]  ;;  %v311_v15 = vld [vmem:[#allocation8 + $0x30] sm:$0xff]  ;;  %v312_v16 = vld [vmem:[#allocation8 + $0x38] sm:$0xff]  ;;  %s2792_s29 = sld [smem:[#allocation37_spill]]  ;;  %s2793_s22 = sld [smem:[#allocation38_spill]] }
  0xe2   :  { %1564 = vmatprep.mubr.msk.f32.mxu1 %vm221_vm0, %v1421_v4  ;;  %1836 = vmatpush3.bf16.msra.mxu1 %v2623_v3  ;;  %v1845_v14 = vpack.c.bf16 %v310_v13, %v309_v12  ;;  %v1849_v17 = vpack.c.bf16 %v312_v16, %v311_v15  ;;  %v313_v18 = vld [vmem:[#allocation8 + $0x40] sm:$0xff]  ;;  %v314_v19 = vld [vmem:[#allocation8 + $0x48] sm:$0xff]  ;;  %v315_v21 = vld [vmem:[#allocation8 + $0x50] sm:$0xff]  ;;  %s2346_s8 = smov [#allocation19]  }
  0xe3   :  { %1838 = vmatprep.subr.bf16.mxu1 %v1837_v7  ;;  %v1853_v20 = vpack.c.bf16 %v314_v19, %v313_v18  ;;  %v316_v22 = vld [vmem:[#allocation8 + $0x58] sm:$0xff]  ;;  %v317_v24 = vld [vmem:[#allocation8 + $0x60] sm:$0xff]  ;;  %v318_v25 = vld [vmem:[#allocation8 + $0x68] sm:$0xff] }
  0xe4   :  { %v1857_v23 = vpack.c.bf16 %v316_v22, %v315_v21  ;;  %v1861_v26 = vpack.c.bf16 %v318_v25, %v317_v24  ;;  %v319_v27 = vld [vmem:[#allocation8 + $0x70] sm:$0xff]  ;;  %v320_v28 = vld [vmem:[#allocation8 + $0x78] sm:$0xff]  ;;  %v448_v34 = vld [vmem:[#allocation10] sm:$0xff] }
  0xe5   :  { %1565 = vmatmul.mubr.msk.f32.vlgmr.msra.gmra.mrb[0].mxu1 %vm221_vm0, %v1422_v10  ;;  %v1865_v29 = vpack.c.bf16 %v320_v28, %v319_v27  ;;  %v449_v35 = vld [vmem:[#allocation10 + $0x8] sm:$0xff]  ;;  %v450_v37 = vld [vmem:[#allocation10 + $0x10] sm:$0xff]  ;;  %v451_v38 = vld [vmem:[#allocation10 + $0x18] sm:$0xff] }
  0xe6   :  { %1840 = vmatpush3.bf16.msra.mxu1 %v1837_v7  ;;  %v1869_v36 = vpack.c.bf16 %v449_v35, %v448_v34  ;;  %v1873_v39 = vpack.c.bf16 %v451_v38, %v450_v37  ;;  %v452_v40 = vld [vmem:[#allocation10 + $0x20] sm:$0xff]  ;;  %v453_v41 = vld [vmem:[#allocation10 + $0x28] sm:$0xff]  ;;  %v454_v43 = vld [vmem:[#allocation10 + $0x30] sm:$0xff] }
  0xe7   :  { %1842 = vmatprep.subr.bf16.mxu1 %v1841_v11  ;;  %v1877_v42 = vpack.c.bf16 %v453_v41, %v452_v40  ;;  %v455_v44 = vld [vmem:[#allocation10 + $0x38] sm:$0xff]  ;;  %v456_v46 = vld [vmem:[#allocation10 + $0x40] sm:$0xff]  ;;  %v457_v47 = vld [vmem:[#allocation10 + $0x48] sm:$0xff] }
  0xe8   :  { %1870 = vmatprep.subr.bf16.mxu0 %v1869_v36  ;;  %v1881_v45 = vpack.c.bf16 %v455_v44, %v454_v43  ;;  %v458_v48 = vld [vmem:[#allocation10 + $0x50] sm:$0xff]  ;;  %v1885_v49 = vpack.c.bf16 %v457_v47, %v456_v46  ;;  %v459_v50 = vld [vmem:[#allocation10 + $0x58] sm:$0xff]  ;;  %v460_v52 = vld [vmem:[#allocation10 + $0x60] sm:$0xff] }
  0xe9   :  { %1872 = vmatpush3.bf16.msra.mxu0 %v1869_v36  ;;  %v1889_v51 = vpack.c.bf16 %v459_v50, %v458_v48  ;;  %v461_v53 = vld [vmem:[#allocation10 + $0x68] sm:$0xff]  ;;  %v462_v55 = vld [vmem:[#allocation10 + $0x70] sm:$0xff]  ;;  %v463_v56 = vld [vmem:[#allocation10 + $0x78] sm:$0xff] }
  0xea   :  { %1844 = vmatpush3.bf16.msra.mxu1 %v1841_v11  ;;  %1874 = vmatprep.subr.bf16.mxu0 %v1873_v39  ;;  %v1893_v54 = vpack.c.bf16 %v461_v53, %v460_v52  ;;  %v1897_v57 = vpack.c.bf16 %v463_v56, %v462_v55  ;;  %v1400_v58 = vld [vmem:[%s2787_s28] ss:$0 sm:$0xff]  ;;  %v668_v35 = vld [vmem:[#allocation11 + $0x8] sm:$0xff]  ;;  %v669_v36 = vld [vmem:[#allocation11 + $0x10] sm:$0xff] }
  0xeb   :  { %1846 = vmatprep.subr.bf16.mxu1 %v1845_v14  ;;  %v1401_v24 = vld [vmem:[%s2788_s2] ss:$0 sm:$0xff]  ;;  %v670_v38 = vld [vmem:[#allocation11 + $0x18] sm:$0xff]  ;;  %v672_v41 = vld [vmem:[#allocation11 + $0x28] sm:$0xff] }
  0xec   :  { %v1402_v27 = vld [vmem:[%s2789_s24] ss:$0 sm:$0xff]  ;;  %v673_v43 = vld [vmem:[#allocation11 + $0x30] sm:$0xff]  ;;  %v674_v44 = vld [vmem:[#allocation11 + $0x38] sm:$0xff]  ;;  %s1384_s24 = sshll.u32 %s2346_s8, 4  ;;  %s1385_s24 = int_to_ptr.vmem [resolvable:$true] %s1384_s24 }
  0xed   :  { %1876 = vmatpush3.bf16.msra.mxu0 %v1873_v39  ;;  %v667_v34 = vld [vmem:[#allocation11] sm:$0xff]  ;;  %v1909_v39 = vpack.c.bf16 %v670_v38, %v669_v36  ;;  %v676_v47 = vld [vmem:[#allocation11 + $0x48] sm:$0xff]  ;;  %v678_v50 = vld [vmem:[#allocation11 + $0x58] sm:$0xff]  ;;  %p2298_p11 = scmp.lt.s32.totalorder %s1385_s24, %s1385_s24 }
  0xee   :  { %1848 = vmatpush3.bf16.msra.mxu1 %v1845_v14  ;;  %1878 = vmatprep.subr.bf16.mxu0 %v1877_v42  ;;  %v1905_v37 = vpack.c.bf16 %v668_v35, %v667_v34  ;;  %v671_v40 = vld [vmem:[#allocation11 + $0x20] sm:$0xff]  ;;  %v680_v53 = vld [vmem:[#allocation11 + $0x68] sm:$0xff]  ;;  %v812_v2 = vld [vmem:[#allocation13 + $0x18] sm:$0xff] }
  0xef   :  { %1850 = vmatprep.subr.bf16.mxu1 %v1849_v17  ;;  %v675_v46 = vld [vmem:[#allocation11 + $0x40] sm:$0xff] }
  0xf0   :  { %v1921_v48 = vpack.c.bf16 %v676_v47, %v675_v46  ;;  %v679_v52 = vld [vmem:[#allocation11 + $0x60] sm:$0xff]  ;;  %v815_v46 = vld [vmem:[#allocation13 + $0x30] sm:$0xff]  ;;  %v816_v47 = vld [vmem:[#allocation13 + $0x38] sm:$0xff] }
  0xf1   :  { %1880 = vmatpush3.bf16.msra.mxu0 %v1877_v42  ;;  %v1913_v42 = vpack.c.bf16 %v672_v41, %v671_v40  ;;  %v1403_v55 = vld [vmem:[%s2790_s5] ss:$0 sm:$0xff]  ;;  %v810_v40 = vld [vmem:[#allocation13 + $0x8] sm:$0xff] }
  0xf2   :  { %1852 = vmatpush3.bf16.msra.mxu1 %v1849_v17  ;;  %1882 = vmatprep.subr.bf16.mxu0 %v1881_v45 }
  0xf3   :  { %1854 = vmatprep.subr.bf16.mxu1 %v1853_v20 }
  0xf5   :  { %1884 = vmatpush3.bf16.msra.mxu0 %v1881_v45  ;;  %v1917_v45 = vpack.c.bf16 %v674_v44, %v673_v43  ;;  %v814_v44 = vld [vmem:[#allocation13 + $0x28] sm:$0xff] }
  0xf6   :  { %1856 = vmatpush3.bf16.msra.mxu1 %v1853_v20  ;;  %1886 = vmatprep.subr.bf16.mxu0 %v1885_v49 }
  0xf7   :  { %1858 = vmatprep.subr.bf16.mxu1 %v1857_v23 }
  0xf9   :  { %1888 = vmatpush3.bf16.msra.mxu0 %v1885_v49  ;;  %v677_v49 = vld [vmem:[#allocation11 + $0x50] sm:$0xff] }
  0xfa   :  { %1860 = vmatpush3.bf16.msra.mxu1 %v1857_v23  ;;  %1890 = vmatprep.subr.bf16.mxu0 %v1889_v51 }
  0xfb   :  { %1862 = vmatprep.subr.bf16.mxu1 %v1861_v26 }
  0xfd   :  { %1892 = vmatpush3.bf16.msra.mxu0 %v1889_v51  ;;  %v1925_v51 = vpack.c.bf16 %v678_v50, %v677_v49  ;;  %v817_v49 = vld [vmem:[#allocation13 + $0x40] sm:$0xff]  ;;  %v818_v50 = vld [vmem:[#allocation13 + $0x48] sm:$0xff] }
  0xfe   :  { %1864 = vmatpush3.bf16.msra.mxu1 %v1861_v26  ;;  %1894 = vmatprep.subr.bf16.mxu0 %v1893_v54 }
  0xff   :  { %1866 = vmatprep.subr.bf16.mxu1 %v1865_v29 }
 0x101   :  { %1896 = vmatpush3.bf16.msra.mxu0 %v1893_v54  ;;  %v1929_v54 = vpack.c.bf16 %v680_v53, %v679_v52  ;;  %v819_v52 = vld [vmem:[#allocation13 + $0x50] sm:$0xff]  ;;  %v820_v53 = vld [vmem:[#allocation13 + $0x58] sm:$0xff] }
 0x102   :  { %1868 = vmatpush3.bf16.msra.mxu1 %v1865_v29  ;;  %1898 = vmatprep.subr.bf16.mxu0 %v1897_v57 }
 0x105   :  { %1900 = vmatpush3.bf16.msra.mxu0 %v1897_v57 }
 0x106   :  { %1906 = vmatprep.subr.bf16.mxu0 %v1905_v37 }
 0x1b8   :  { %v1566_v30 = vpop.f32.mrb[0].mxu1 }
 0x1b9   :  { %v294_v31 = vpop.f32.mrb[1].mxu1  ;;  %v304_v33 = vadd.f32 %v1566_v30, %v220_v1 }
 0x1ba   :  { %v303_v32 = vadd.f32 %v294_v31, %v219_v0 }
 0x1bc   :  { %1599 = vmatprep.mubr.f32.mxu1 %v303_v32 }
 0x1bd   :  { %1600 = vmatmul.mubr.f32.vlgmr.msra.gmra.mrb[2].mxu1 %v304_v33 }
 0x1be   :  { %1641 = vmatprep.mubr.msk.f32.mxu1 %vm221_vm0, %v1421_v4 }
 0x290   :  { %v1601_v59 = vpop.f32.mrb[2].mxu1 }
 0x291   :  { %v400_v60 = vadd.f32 %v1601_v59, %v1400_v58  ;;  %v394_v61 = vpop.f32.mrb[3].mxu1 }
 0x292   :  { %v395_v62 = vadd.f32 %v1400_v58, %v394_v61 }
 0x294   :  { %v405_v63 = vadd.f32 %v400_v60, %v395_v62 }
 0x296   :  { %v406_v0 = vrot.slane %v405_v63, 4 }
 0x298   :  { %v407_v1 = vadd.f32 %v406_v0, %v405_v63 }
 0x29a   :  { %v408_v4 = vrot.slane %v407_v1, 2 }
 0x29c   :  { %v409_v5 = vadd.f32 %v408_v4, %v407_v1 }
 0x29e   :  { %v410_v6 = vrot.slane %v409_v5, 1 }
 0x2a0   :  { %v411_v7 = vadd.f32 %v410_v6, %v409_v5 }
 0x2a2   :  { %v413_v8 = vmul.f32 0.0625, %v411_v7 }
 0x2a4   :  { %v414_v9 = vsub.f32 %v395_v62, %v413_v8  ;;  %v415_v11 = vsub.f32 %v400_v60, %v413_v8 }
 0x2a6   :  { %v416_v12 = vmul.f32 %v414_v9, %v414_v9  ;;  %v417_v13 = vmul.f32 %v415_v11, %v415_v11 }
 0x2a8   :  { %v418_v14 = vadd.f32 %v417_v13, %v416_v12 }
 0x2aa   :  { %v419_v15 = vrot.slane %v418_v14, 4 }
 0x2ac   :  { %v420_v16 = vadd.f32 %v419_v15, %v418_v14 }
 0x2ae   :  { %v421_v17 = vrot.slane %v420_v16, 2 }
 0x2b0   :  { %v422_v18 = vadd.f32 %v421_v17, %v420_v16 }
 0x2b2   :  { %v423_v19 = vrot.slane %v422_v18, 1 }
 0x2b4   :  { %v424_v20 = vadd.f32 %v423_v19, %v422_v18 }
 0x2b6   :  { %v425_v21 = vmul.f32 0.0625, %v424_v20 }
 0x2b8   :  { %v426_v22 = vadd.f32 1e-05, %v425_v21  ;;  %v1404_v21 = vld [vmem:[%s2791_s30] ss:$0 sm:$0xff] }
 0x2ba   :  { %2065 = vrsqrt.f32 %v426_v22 }
 0x2c4   :  { %v2066_v23 = vpop.eup %2065 }
 0x2c5   :  { %v428_v25 = vmul.f32 %v2066_v23, %v414_v9  ;;  %v429_v26 = vmul.f32 %v2066_v23, %v415_v11 }
 0x2c7   :  { %v436_v28 = vmul.f32 %v1401_v24, %v428_v25  ;;  %v437_v29 = vmul.f32 %v1401_v24, %v429_v26  ;;  %v1405_v24 = vld [vmem:[%s2747_s10] ss:$0 sm:$0xff] }
 0x2c9   :  { %v444_v30 = vadd.f32 %v1402_v27, %v436_v28  ;;  %v445_v31 = vadd.f32 %v1402_v27, %v437_v29 }
 0x2cb   :  { %v446_v32 = vmax.f32 %v444_v30, 0.0  ;;  %v447_v33 = vmax.f32 %v445_v31, 0.0 }
 0x2cd   :  { %1634 = vmatprep.mubr.f32.mxu0 %v446_v32  ;;  %v681_v32 = vld [vmem:[#allocation11 + $0x70] sm:$0xff] }
 0x2ce   :  { %1635 = vmatmul.mubr.f32.vlgmr.msra.gmra.mrb[0].mxu0 %v447_v33  ;;  %v682_v33 = vld [vmem:[#allocation11 + $0x78] sm:$0xff] }
 0x2cf   :  { %1908 = vmatpush3.bf16.msra.mxu0 %v1905_v37  ;;  %v1933_v34 = vpack.c.bf16 %v682_v33, %v681_v32 }
 0x2d0   :  { %1910 = vmatprep.subr.bf16.mxu0 %v1909_v39 }
 0x2d3   :  { %1912 = vmatpush3.bf16.msra.mxu0 %v1909_v39  ;;  %v809_v39 = vld [vmem:[#allocation13] sm:$0xff] }
 0x2d4   :  { %1914 = vmatprep.subr.bf16.mxu0 %v1913_v42  ;;  %v1937_v41 = vpack.c.bf16 %v810_v40, %v809_v39  ;;  %v2345_v39 = vmov 0.0   ;;  %v1095_v40 = vld [vmem:[#allocation14] sm:$0xff] }
 0x2d7   :  { %1916 = vmatpush3.bf16.msra.mxu0 %v1913_v42  ;;  %v811_v42 = vld [vmem:[#allocation13 + $0x10] sm:$0xff] }
 0x2d8   :  { %1918 = vmatprep.subr.bf16.mxu0 %v1917_v45  ;;  %v1941_v43 = vpack.c.bf16 %v812_v2, %v811_v42  ;;  %v1098_v2 = vld [vmem:[#allocation14 + $0x18] sm:$0xff] }
 0x2db   :  { %1920 = vmatpush3.bf16.msra.mxu0 %v1917_v45 }
 0x2dc   :  { %1922 = vmatprep.subr.bf16.mxu0 %v1921_v48 }
 0x2df   :  { %1924 = vmatpush3.bf16.msra.mxu0 %v1921_v48  ;;  %v1949_v48 = vpack.c.bf16 %v816_v47, %v815_v46  ;;  %v1101_v46 = vld [vmem:[#allocation14 + $0x30] sm:$0xff]  ;;  %v1102_v47 = vld [vmem:[#allocation14 + $0x38] sm:$0xff] }
 0x2e0   :  { %1926 = vmatprep.subr.bf16.mxu0 %v1925_v51 }
 0x2e3   :  { %1928 = vmatpush3.bf16.msra.mxu0 %v1925_v51  ;;  %v1953_v51 = vpack.c.bf16 %v818_v50, %v817_v49  ;;  %v1103_v49 = vld [vmem:[#allocation14 + $0x40] sm:$0xff]  ;;  %v1104_v50 = vld [vmem:[#allocation14 + $0x48] sm:$0xff] }
 0x2e4   :  { %1930 = vmatprep.subr.bf16.mxu0 %v1929_v54 }
 0x2e7   :  { %1932 = vmatpush3.bf16.msra.mxu0 %v1929_v54  ;;  %v1957_v54 = vpack.c.bf16 %v820_v53, %v819_v52  ;;  %v1105_v52 = vld [vmem:[#allocation14 + $0x50] sm:$0xff]  ;;  %v1106_v53 = vld [vmem:[#allocation14 + $0x58] sm:$0xff] }
 0x2e8   :  { %1934 = vmatprep.subr.bf16.mxu0 %v1933_v34 }
 0x2eb   :  { %1936 = vmatpush3.bf16.msra.mxu0 %v1933_v34 }
 0x3a1   :  { %v1636_v56 = vpop.f32.mrb[0].mxu0 }
 0x3a2   :  { %v543_v57 = vadd.f32 %v1636_v56, %v1403_v55  ;;  %v537_v58 = vpop.f32.mrb[1].mxu0  ;;  %v822_v56 = vld [vmem:[#allocation13 + $0x68] sm:$0xff] }
 0x3a3   :  { %v538_v59 = vadd.f32 %v1403_v55, %v537_v58  ;;  %v821_v55 = vld [vmem:[#allocation13 + $0x60] sm:$0xff]  ;;  %v823_v58 = vld [vmem:[#allocation13 + $0x70] sm:$0xff] }
 0x3a5   :  { %v548_v60 = vadd.f32 %v543_v57, %v538_v59 }
 0x3a7   :  { %v549_v61 = vrot.slane %v548_v60, 4 }
 0x3a9   :  { %v550_v62 = vadd.f32 %v549_v61, %v548_v60  ;;  %v1408_v61 = vld [vmem:[%s2749_s12] ss:$0 sm:$0xff] }
 0x3ab   :  { %v551_v63 = vrot.slane %v550_v62, 2 }
 0x3ad   :  { %v552_v0 = vadd.f32 %v551_v63, %v550_v62 }
 0x3af   :  { %v553_v1 = vrot.slane %v552_v0, 1 }
 0x3b1   :  { %v554_v4 = vadd.f32 %v553_v1, %v552_v0 }
 0x3b3   :  { %v555_v5 = vmul.f32 0.0625, %v554_v4 }
 0x3b5   :  { %v556_v6 = vsub.f32 %v538_v59, %v555_v5  ;;  %v557_v7 = vsub.f32 %v543_v57, %v555_v5  ;;  %v1961_v57 = vpack.c.bf16 %v822_v56, %v821_v55  ;;  %v824_v59 = vld [vmem:[#allocation13 + $0x78] sm:$0xff]  ;;  %v1107_v55 = vld [vmem:[#allocation14 + $0x60] sm:$0xff]  ;;  %v1108_v56 = vld [vmem:[#allocation14 + $0x68] sm:$0xff] }
 0x3b6   :  { %v1965_v60 = vpack.c.bf16 %v824_v59, %v823_v58  ;;  %v1109_v58 = vld [vmem:[#allocation14 + $0x70] sm:$0xff]  ;;  %v1110_v59 = vld [vmem:[#allocation14 + $0x78] sm:$0xff] }
 0x3b7   :  { %v558_v8 = vmul.f32 %v556_v6, %v556_v6  ;;  %v559_v9 = vmul.f32 %v557_v7, %v557_v7 }
 0x3b9   :  { %v560_v11 = vadd.f32 %v559_v9, %v558_v8 }
 0x3bb   :  { %v561_v12 = vrot.slane %v560_v11, 4 }
 0x3bd   :  { %v562_v13 = vadd.f32 %v561_v12, %v560_v11 }
 0x3bf   :  { %v563_v14 = vrot.slane %v562_v13, 2 }
 0x3c1   :  { %v564_v15 = vadd.f32 %v563_v14, %v562_v13 }
 0x3c3   :  { %v565_v16 = vrot.slane %v564_v15, 1 }
 0x3c5   :  { %v566_v17 = vadd.f32 %v565_v16, %v564_v15 }
 0x3c7   :  { %v567_v18 = vmul.f32 0.0625, %v566_v17 }
 0x3c9   :  { %v568_v19 = vadd.f32 1e-05, %v567_v18 }
 0x3cb   :  { %2067 = vrsqrt.f32 %v568_v19 }
 0x3d5   :  { %v2068_v20 = vpop.eup %2067 }
 0x3d6   :  { %v570_v22 = vmul.f32 %v2068_v20, %v556_v6  ;;  %v571_v23 = vmul.f32 %v2068_v20, %v557_v7 }
 0x3d8   :  { %v578_v25 = vmul.f32 %v1404_v21, %v570_v22  ;;  %v579_v26 = vmul.f32 %v1404_v21, %v571_v23 }
 0x3da   :  { %v586_v27 = vadd.f32 %v1405_v24, %v578_v25  ;;  %v587_v28 = vadd.f32 %v1405_v24, %v579_v26 }
 0x3dc   :  { %v588_v29 = vmax.f32 %v586_v27, 0.0  ;;  %v589_v30 = vmax.f32 %v587_v28, 0.0  ;;  %v1409_v27 = vld [vmem:[%s2750_s13] ss:$0 sm:$0xff] }
 0x3de   :  { %v1901_v31 = vpack.c.bf16 %v589_v30, %v588_v29 }
 0x3e0   :  { %1902 = vmatprep.subr.bf16.mxu1 %v1901_v31 }
 0x3e1   :  { %1904 = vmatpush3.bf16.msra.mxu1 %v1901_v31 }
 0x3e2   :  { %1938 = vmatprep.subr.bf16.mxu1 %v1937_v41 }
 0x3e4   :  { %1642 = vmatmul.mubr.msk.f32.vlgmr.msra.gmra.mrb[4].mxu1 %vm221_vm0, %v1422_v10  ;;  %v813_v10 = vld [vmem:[#allocation13 + $0x20] sm:$0xff] }
 0x3e5   :  { %1940 = vmatpush3.bf16.msra.mxu1 %v1937_v41  ;;  %v1945_v45 = vpack.c.bf16 %v814_v44, %v813_v10  ;;  %v1097_v41 = vld [vmem:[#allocation14 + $0x10] sm:$0xff]  ;;  %v1099_v10 = vld [vmem:[#allocation14 + $0x20] sm:$0xff]  ;;  %v1100_v44 = vld [vmem:[#allocation14 + $0x28] sm:$0xff] }
 0x3e6   :  { %1942 = vmatprep.subr.bf16.mxu1 %v1941_v43 }
 0x3e9   :  { %1944 = vmatpush3.bf16.msra.mxu1 %v1941_v43  ;;  %v1979_v43 = vpack.c.bf16 %v1098_v2, %v1097_v41  ;;  %v1190_v2 = vld [vmem:[#allocation16 + $0x10] sm:$0xff] }
 0x3ea   :  { %1946 = vmatprep.subr.bf16.mxu1 %v1945_v45 }
 0x3ed   :  { %1948 = vmatpush3.bf16.msra.mxu1 %v1945_v45  ;;  %v1982_v45 = vpack.c.bf16 %v1100_v44, %v1099_v10  ;;  %v1192_v44 = vld [vmem:[#allocation16 + $0x20] sm:$0xff] }
 0x3ee   :  { %1950 = vmatprep.subr.bf16.mxu1 %v1949_v48 }
 0x3f1   :  { %1952 = vmatpush3.bf16.msra.mxu1 %v1949_v48  ;;  %v1985_v48 = vpack.c.bf16 %v1102_v47, %v1101_v46  ;;  %v1194_v47 = vld [vmem:[#allocation16 + $0x30] sm:$0xff] }
 0x3f2   :  { %1954 = vmatprep.subr.bf16.mxu1 %v1953_v51 }
 0x3f5   :  { %1956 = vmatpush3.bf16.msra.mxu1 %v1953_v51  ;;  %v1988_v51 = vpack.c.bf16 %v1104_v50, %v1103_v49  ;;  %v1197_v50 = vld [vmem:[#allocation16 + $0x48] sm:$0xff] }
 0x3f6   :  { %1958 = vmatprep.subr.bf16.mxu1 %v1957_v54 }
 0x3f9   :  { %1960 = vmatpush3.bf16.msra.mxu1 %v1957_v54  ;;  %v1991_v54 = vpack.c.bf16 %v1106_v53, %v1105_v52  ;;  %v1198_v52 = vld [vmem:[#allocation16 + $0x50] sm:$0xff]  ;;  %v1199_v53 = vld [vmem:[#allocation16 + $0x58] sm:$0xff] }
 0x3fa   :  { %1962 = vmatprep.subr.bf16.mxu1 %v1961_v57 }
 0x3fd   :  { %1964 = vmatpush3.bf16.msra.mxu1 %v1961_v57  ;;  %v1994_v57 = vpack.c.bf16 %v1108_v56, %v1107_v55  ;;  %v1200_v55 = vld [vmem:[#allocation16 + $0x60] sm:$0xff]  ;;  %v1201_v56 = vld [vmem:[#allocation16 + $0x68] sm:$0xff] }
 0x3fe   :  { %1966 = vmatprep.subr.bf16.mxu1 %v1965_v60 }
 0x401   :  { %1968 = vmatpush3.bf16.msra.mxu1 %v1965_v60  ;;  %v1997_v60 = vpack.c.bf16 %v1110_v59, %v1109_v58  ;;  %v1202_v58 = vld [vmem:[#allocation16 + $0x70] sm:$0xff]  ;;  %v1203_v59 = vld [vmem:[#allocation16 + $0x78] sm:$0xff] }
 0x4b7   :  { %v1643_v35 = vpop.f32.mrb[4].mxu1 }
 0x4b8   :  { %v656_v36 = vpop.f32.mrb[5].mxu1  ;;  %v666_v38 = vadd.f32 %v1643_v35, %v589_v30  ;;  %v1410_v30 = vld [vmem:[%s2751_s14] ss:$0 sm:$0xff] }
 0x4b9   :  { %v665_v37 = vadd.f32 %v656_v36, %v588_v29 }
 0x4bb   :  { %1676 = vmatprep.mubr.f32.mxu0 %v665_v37  ;;  %v2343_v37 = vmov 0.0|0.0  }
 0x4bc   :  { %1677 = vmatmul.mubr.f32.vlgmr.msra.gmra.mrb[2].mxu0 %v666_v38  ;;  %1969 = vmatprep.subr.bf16.mxu1 %v2343_v37  ;;  %v2667_v38 = vld [vmem:[#allocation7] sm:$0xff] }
 0x4bd   :  { %1975 = vmatprep.subr.bf16.mxu0 %v2343_v37  ;;  %1760 = vmatprep.mubr.msk.f32.mxu0 %vm2344_vm1, %v2345_v39 }
 0x58f   :  { %v1678_v62 = vpop.f32.mrb[2].mxu0 }
 0x590   :  { %v762_v63 = vadd.f32 %v1678_v62, %v1408_v61  ;;  %v756_v0 = vpop.f32.mrb[3].mxu0 }
 0x591   :  { %v757_v1 = vadd.f32 %v1408_v61, %v756_v0  ;;  %v1411_v61 = vld [vmem:[%s2753_s16] ss:$0 sm:$0xff] }
 0x593   :  { %v767_v4 = vadd.f32 %v762_v63, %v757_v1 }
 0x595   :  { %v768_v5 = vrot.slane %v767_v4, 4 }
 0x597   :  { %v769_v6 = vadd.f32 %v768_v5, %v767_v4 }
 0x599   :  { %v770_v7 = vrot.slane %v769_v6, 2 }
 0x59b   :  { %v771_v8 = vadd.f32 %v770_v7, %v769_v6 }
 0x59d   :  { %v772_v9 = vrot.slane %v771_v8, 1 }
 0x59f   :  { %v773_v11 = vadd.f32 %v772_v9, %v771_v8 }
 0x5a1   :  { %v774_v12 = vmul.f32 0.0625, %v773_v11 }
 0x5a3   :  { %v775_v13 = vsub.f32 %v757_v1, %v774_v12  ;;  %v776_v14 = vsub.f32 %v762_v63, %v774_v12 }
 0x5a5   :  { %v777_v15 = vmul.f32 %v775_v13, %v775_v13  ;;  %v778_v16 = vmul.f32 %v776_v14, %v776_v14 }
 0x5a7   :  { %v779_v17 = vadd.f32 %v778_v16, %v777_v15 }
 0x5a9   :  { %v780_v18 = vrot.slane %v779_v17, 4 }
 0x5ab   :  { %v781_v19 = vadd.f32 %v780_v18, %v779_v17 }
 0x5ad   :  { %v782_v20 = vrot.slane %v781_v19, 2 }
 0x5af   :  { %v783_v21 = vadd.f32 %v782_v20, %v781_v19 }
 0x5b1   :  { %v784_v22 = vrot.slane %v783_v21, 1 }
 0x5b3   :  { %v785_v23 = vadd.f32 %v784_v22, %v783_v21 }
 0x5b5   :  { %v786_v24 = vmul.f32 0.0625, %v785_v23 }
 0x5b7   :  { %v787_v25 = vadd.f32 1e-05, %v786_v24 }
 0x5b9   :  { %2069 = vrsqrt.f32 %v787_v25 }
 0x5c3   :  { %v2070_v26 = vpop.eup %2069 }
 0x5c4   :  { %v789_v28 = vmul.f32 %v2070_v26, %v775_v13  ;;  %v790_v29 = vmul.f32 %v2070_v26, %v776_v14 }
 0x5c6   :  { %v797_v31 = vmul.f32 %v1409_v27, %v789_v28  ;;  %v798_v32 = vmul.f32 %v1409_v27, %v790_v29  ;;  %v1412_v27 = vld [vmem:[%s2754_s17] ss:$0 sm:$0xff] }
 0x5c8   :  { %v805_v33 = vadd.f32 %v1410_v30, %v797_v31  ;;  %v806_v34 = vadd.f32 %v1410_v30, %v798_v32  ;;  %v1413_v30 = vld [vmem:[%s2755_s18] ss:$0 sm:$0xff] }
 0x5ca   :  { %v807_v35 = vmax.f32 %v805_v33, 0.0  ;;  %v808_v36 = vmax.f32 %v806_v34, 0.0 }
 0x5cc   :  { %1711 = vmatprep.mubr.f32.mxu1 %v807_v35 }
 0x5cd   :  { %1712 = vmatmul.mubr.f32.vlgmr.msra.gmra.mrb[6].mxu1 %v808_v36 }
 0x5ce   :  { %1971 = vmatpush3.bf16.msra.mxu1 %v2623_v3  ;;  %1718 = vmatprep.mubr.msk.f32.mxu1 %vm2344_vm1, %v2345_v39  ;;  %v1096_v3 = vld [vmem:[#allocation14 + $0x8] sm:$0xff] }
 0x5cf   :  { %1972 = vmatprep.subr.bf16.mxu1 %v2343_v37  ;;  %v1976_v42 = vpack.c.bf16 %v1096_v3, %v1095_v40  ;;  %v1188_v40 = vld [vmem:[#allocation16] sm:$0xff]  ;;  %v1189_v3 = vld [vmem:[#allocation16 + $0x8] sm:$0xff] }
 0x5d1   :  { %1719 = vmatmul.mubr.msk.f32.vlgmr.msra.gmra.mrb[8].mxu1 %vm221_vm0, %v2667_v38  ;;  %1977 = vmatpush3.bf16.msra.mxu0 %v1976_v42  ;;  %v2000_v42 = vpack.c.bf16 %v1189_v3, %v1188_v40 }
 0x5d2   :  { %1725 = vmatprep.mubr.msk.f32.mxu1 %vm2344_vm1, %v2345_v39  ;;  %1978 = vmatprep.subr.bf16.mxu0 %v2343_v37 }
 0x5d5   :  { %1980 = vmatpush3.bf16.msra.mxu0 %v1979_v43  ;;  %v1191_v43 = vld [vmem:[#allocation16 + $0x18] sm:$0xff] }
 0x5d6   :  { %1981 = vmatprep.subr.bf16.mxu0 %v2343_v37  ;;  %v2003_v10 = vpack.c.bf16 %v1191_v43, %v1190_v2 }
 0x5d9   :  { %1983 = vmatpush3.bf16.msra.mxu0 %v1982_v45  ;;  %v1193_v45 = vld [vmem:[#allocation16 + $0x28] sm:$0xff] }
 0x5da   :  { %1984 = vmatprep.subr.bf16.mxu0 %v2343_v37  ;;  %v2006_v46 = vpack.c.bf16 %v1193_v45, %v1192_v44 }
 0x5dd   :  { %1986 = vmatpush3.bf16.msra.mxu0 %v1985_v48  ;;  %v1195_v48 = vld [vmem:[#allocation16 + $0x38] sm:$0xff] }
 0x5de   :  { %1987 = vmatprep.subr.bf16.mxu0 %v2343_v37  ;;  %v2009_v49 = vpack.c.bf16 %v1195_v48, %v1194_v47 }
 0x5e1   :  { %1989 = vmatpush3.bf16.msra.mxu0 %v1988_v51 }
 0x5e2   :  { %1990 = vmatprep.subr.bf16.mxu0 %v2343_v37 }
 0x5e5   :  { %1992 = vmatpush3.bf16.msra.mxu0 %v1991_v54  ;;  %v2015_v54 = vpack.c.bf16 %v1199_v53, %v1198_v52 }
 0x5e6   :  { %1993 = vmatprep.subr.bf16.mxu0 %v2343_v37 }
 0x5e9   :  { %1995 = vmatpush3.bf16.msra.mxu0 %v1994_v57  ;;  %v2018_v57 = vpack.c.bf16 %v1201_v56, %v1200_v55 }
 0x5ea   :  { %1996 = vmatprep.subr.bf16.mxu0 %v2343_v37 }
 0x5ed   :  { %1998 = vmatpush3.bf16.msra.mxu0 %v1997_v60  ;;  %v2021_v60 = vpack.c.bf16 %v1203_v59, %v1202_v58 }
 0x5ee   :  { %2023 = vmatprep.subr.bf16.mxu0 %v2343_v37 }
 0x6a0   :  { %v1713_v62 = vpop.f32.mrb[6].mxu1 }
 0x6a1   :  { %v904_v63 = vadd.f32 %v1713_v62, %v1411_v61  ;;  %v898_v0 = vpop.f32.mrb[7].mxu1 }
 0x6a2   :  { %v899_v1 = vadd.f32 %v1411_v61, %v898_v0  ;;  %v1285_v0 = vld [vmem:[#allocation17 + $0x8] sm:$0xff] }
 0x6a4   :  { %v909_v4 = vadd.f32 %v904_v63, %v899_v1  ;;  %v1021_v61 = vpop.f32.mrb[8].mxu1 }
 0x6a5   :  { %v1720_v62 = vpop.f32.mrb[9].mxu1  ;;  %1761 = vmatmul.mubr.f32.vlgmr.msra.gmra.mrb[4].mxu0 %v1021_v61 }
 0x6a6   :  { %v910_v5 = vrot.slane %v909_v4, 4  ;;  %1830 = vmatprep.mubr.msk.f32.mxu0 %vm2344_vm1, %v2345_v39 }
 0x6a8   :  { %v911_v6 = vadd.f32 %v910_v5, %v909_v4  ;;  %v1287_v5 = vld [vmem:[#allocation17 + $0x18] sm:$0xff] }
 0x6aa   :  { %v912_v7 = vrot.slane %v911_v6, 2 }
 0x6ac   :  { %v913_v8 = vadd.f32 %v912_v7, %v911_v6  ;;  %v1288_v7 = vld [vmem:[#allocation17 + $0x20] sm:$0xff] }
 0x6ae   :  { %v914_v9 = vrot.slane %v913_v8, 1 }
 0x6b0   :  { %v915_v11 = vadd.f32 %v914_v9, %v913_v8  ;;  %v1289_v8 = vld [vmem:[#allocation17 + $0x28] sm:$0xff] }
 0x6b1   :  { %v2030_v9 = vpack.c.bf16 %v1289_v8, %v1288_v7 }
 0x6b2   :  { %v916_v12 = vmul.f32 0.0625, %v915_v11  ;;  %v1290_v11 = vld [vmem:[#allocation17 + $0x30] sm:$0xff] }
 0x6b4   :  { %v917_v13 = vsub.f32 %v899_v1, %v916_v12  ;;  %v918_v14 = vsub.f32 %v904_v63, %v916_v12  ;;  %v1284_v63 = vld [vmem:[#allocation17] sm:$0xff]  ;;  %v1286_v1 = vld [vmem:[#allocation17 + $0x10] sm:$0xff]  ;;  %v1291_v12 = vld [vmem:[#allocation17 + $0x38] sm:$0xff] }
 0x6b5   :  { %v2024_v4 = vpack.c.bf16 %v1285_v0, %v1284_v63  ;;  %v2027_v6 = vpack.c.bf16 %v1287_v5, %v1286_v1 }
 0x6b6   :  { %v919_v15 = vmul.f32 %v917_v13, %v917_v13  ;;  %v920_v16 = vmul.f32 %v918_v14, %v918_v14 }
 0x6b7   :  { %2025 = vmatpush3.bf16.msra.mxu0 %v2024_v4 }
 0x6b8   :  { %v921_v17 = vadd.f32 %v920_v16, %v919_v15  ;;  %2026 = vmatprep.subr.bf16.mxu0 %v2343_v37  ;;  %v1294_v16 = vld [vmem:[#allocation17 + $0x50] sm:$0xff] }
 0x6ba   :  { %v922_v18 = vrot.slane %v921_v17, 4 }
 0x6bb   :  { %2028 = vmatpush3.bf16.msra.mxu0 %v2027_v6 }
 0x6bc   :  { %v923_v19 = vadd.f32 %v922_v18, %v921_v17  ;;  %2029 = vmatprep.subr.bf16.mxu0 %v2343_v37  ;;  %v1295_v17 = vld [vmem:[#allocation17 + $0x58] sm:$0xff] }
 0x6bd   :  { %v2039_v18 = vpack.c.bf16 %v1295_v17, %v1294_v16 }
 0x6be   :  { %v924_v20 = vrot.slane %v923_v19, 2 }
 0x6bf   :  { %2031 = vmatpush3.bf16.msra.mxu0 %v2030_v9 }
 0x6c0   :  { %v925_v21 = vadd.f32 %v924_v20, %v923_v19  ;;  %2032 = vmatprep.subr.bf16.mxu0 %v2343_v37 }
 0x6c2   :  { %v926_v22 = vrot.slane %v925_v21, 1 }
 0x6c4   :  { %v927_v23 = vadd.f32 %v926_v22, %v925_v21 }
 0x6c6   :  { %v928_v24 = vmul.f32 0.0625, %v927_v23  ;;  %v1296_v23 = vld [vmem:[#allocation17 + $0x60] sm:$0xff] }
 0x6c8   :  { %v929_v25 = vadd.f32 1e-05, %v928_v24  ;;  %v1297_v24 = vld [vmem:[#allocation17 + $0x68] sm:$0xff] }
 0x6ca   :  { %2071 = vrsqrt.f32 %v929_v25  ;;  %v2042_v25 = vpack.c.bf16 %v1297_v24, %v1296_v23 }
 0x6d4   :  { %v2072_v26 = vpop.eup %2071 }
 0x6d5   :  { %v931_v28 = vmul.f32 %v2072_v26, %v917_v13  ;;  %v932_v29 = vmul.f32 %v2072_v26, %v918_v14  ;;  %v2033_v13 = vpack.c.bf16 %v1291_v12, %v1290_v11  ;;  %v1293_v14 = vld [vmem:[#allocation17 + $0x48] sm:$0xff]  ;;  %v1298_v26 = vld [vmem:[#allocation17 + $0x70] sm:$0xff] }
 0x6d7   :  { %v939_v31 = vmul.f32 %v1412_v27, %v931_v28  ;;  %v940_v32 = vmul.f32 %v1412_v27, %v932_v29  ;;  %2034 = vmatpush3.bf16.msra.mxu0 %v2033_v13  ;;  %v1299_v27 = vld [vmem:[#allocation17 + $0x78] sm:$0xff]  ;;  %v1416_v29 = vld [vmem:[%s2757_s20] ss:$0 sm:$0xff]  ;;  %s2293_s20 = scalar_lea.vmem %s1385_s24, 128 }
 0x6d8   :  { %2035 = vmatprep.subr.bf16.mxu0 %v2343_v37  ;;  %v2045_v28 = vpack.c.bf16 %v1299_v27, %v1298_v26  ;;  %p2294_p10 = scmp.ne.s32.totalorder %s1385_s24, %s2293_s20  ;;  %p2299_p12 = scmp.lt.s32.totalorder %s2293_s20, %s2293_s20 }
 0x6d9   :  { %v947_v33 = vadd.f32 %v1413_v30, %v939_v31  ;;  %v948_v34 = vadd.f32 %v1413_v30, %v940_v32  ;;  %v1417_v32 = vld [vmem:[%s2792_s29] ss:$0 sm:$0xff] }
 0x6da   :  { %p2300_p13 = por %p2299_p12, %p2298_p11 }
 0x6db   :  { %v949_v35 = vmax.f32 %v947_v33, 0.0  ;;  %v950_v36 = vmax.f32 %v948_v34, 0.0 }
 0x6dc   :  { %p2301_p0 = pnand %p2300_p13, %p2294_p10 }
 0x6dd   :  { %v1973_v41 = vpack.c.bf16 %v950_v36, %v949_v35 }
 0x6df   :  { %1974 = vmatpush3.bf16.msra.mxu1 %v1973_v41 }
 0x6e0   :  { %1999 = vmatprep.subr.bf16.mxu1 %v2343_v37 }
 0x6e2   :  { %1726 = vmatmul.mubr.msk.f32.vlgmr.msra.gmra.mrb[10].mxu1 %vm221_vm0, %v2667_v38  ;;  %v1196_v38 = vld [vmem:[#allocation16 + $0x40] sm:$0xff] }
 0x6e3   :  { %2001 = vmatpush3.bf16.msra.mxu1 %v2000_v42  ;;  %1795 = vmatprep.mubr.msk.f32.mxu1 %vm2344_vm1, %v2345_v39  ;;  %v2012_v51 = vpack.c.bf16 %v1197_v50, %v1196_v38  ;;  %v1292_v39 = vld [vmem:[#allocation17 + $0x40] sm:$0xff] }
 0x6e4   :  { %2002 = vmatprep.subr.bf16.mxu1 %v2343_v37  ;;  %v2036_v15 = vpack.c.bf16 %v1293_v14, %v1292_v39 }
 0x6e6   :  { %2037 = vmatpush3.bf16.msra.mxu0 %v2036_v15 }
 0x6e7   :  { %2004 = vmatpush3.bf16.msra.mxu1 %v2003_v10  ;;  %2038 = vmatprep.subr.bf16.mxu0 %v2343_v37 }
 0x6e8   :  { %2005 = vmatprep.subr.bf16.mxu1 %v2343_v37 }
 0x6ea   :  { %2040 = vmatpush3.bf16.msra.mxu0 %v2039_v18 }
 0x6eb   :  { %2007 = vmatpush3.bf16.msra.mxu1 %v2006_v46  ;;  %2041 = vmatprep.subr.bf16.mxu0 %v2343_v37 }
 0x6ec   :  { %2008 = vmatprep.subr.bf16.mxu1 %v2343_v37 }
 0x6ee   :  { %2043 = vmatpush3.bf16.msra.mxu0 %v2042_v25 }
 0x6ef   :  { %2010 = vmatpush3.bf16.msra.mxu1 %v2009_v49  ;;  %2044 = vmatprep.subr.bf16.mxu0 %v2343_v37 }
 0x6f0   :  { %2011 = vmatprep.subr.bf16.mxu1 %v2343_v37 }
 0x6f2   :  { %2046 = vmatpush3.bf16.msra.mxu0 %v2045_v28 }
 0x6f3   :  { %2013 = vmatpush3.bf16.msra.mxu1 %v2012_v51 }
 0x6f4   :  { %2014 = vmatprep.subr.bf16.mxu1 %v2343_v37 }
 0x6f7   :  { %2016 = vmatpush3.bf16.msra.mxu1 %v2015_v54 }
 0x6f8   :  { %2017 = vmatprep.subr.bf16.mxu1 %v2343_v37 }
 0x6fb   :  { %2019 = vmatpush3.bf16.msra.mxu1 %v2018_v57 }
 0x6fc   :  { %2020 = vmatprep.subr.bf16.mxu1 %v2343_v37  ;;  %v1418_v37 = vld [vmem:[%s2793_s22] ss:$0 sm:$0xff] }
 0x6ff   :  { %2022 = vmatpush3.bf16.msra.mxu1 %v2021_v60 }
 0x778   :  { %v1184_v21 = vpop.f32.mrb[4].mxu0 }
 0x779   :  { %v1762_v22 = vpop.f32.mrb[5].mxu0  ;;  %v1185_v30 = vadd.f32 %v1416_v29, %v1184_v21 }
 0x7b5   :  { %v1091_v19 = vpop.f32.mrb[10].mxu1 }
 0x7b6   :  { %v1727_v20 = vpop.f32.mrb[11].mxu1  ;;  %1796 = vmatmul.mubr.f32.vlgmr.msra.gmra.mrb[12].mxu1 %v1091_v19 }
 0x889   :  { %v1270_v31 = vpop.f32.mrb[12].mxu1 }
 0x88a   :  { %v1274_v33 = vadd.f32 %v1270_v31, %v1185_v30  ;;  %v1797_v34 = vpop.f32.mrb[13].mxu1 }
 0x88c   :  { %v1282_v35 = vadd.f32 %v1417_v32, %v1274_v33 }
 0x88e   :  { %v1283_v36 = vmax.f32 %v1282_v35, 0.0 }
 0x890   :  { %1831 = vmatmul.mubr.f32.vlgmr.msra.gmra.mrb[6].mxu0 %v1283_v36 }
 0x963   :  { %v1373_v40 = vpop.f32.mrb[6].mxu0 }
 0x964   :  { %v1374_v3 = vadd.f32 %v1418_v37, %v1373_v40  ;;  %v1832_v41 = vpop.f32.mrb[7].mxu0 }
 0x966   :  { %1377 = vst [vmem:[#allocation19] sm:$0xff] %v1374_v3 }
 0x967   :  { %2304 = shalt.err (!%p2301_p0)
}
 0x968   :  { %s2794_s5 = sld [smem:[#allocation39_spill]] }
 0x96e   :  { %s2305_s19 = scalar_lea.hbm %s2794_s5, 128 }
 0x96f   :  { %p2306_p1 = scmp.ne.s32.totalorder %s2794_s5, %s2305_s19  ;;  %p2309_p2 = scmp.lt.u32.totalorder %s2305_s19, %s2794_s5 }
 0x971   :  { %p2311_p3 = pnand %p2309_p2, %p2306_p1 }
 0x973   :  { %2314 = shalt.err (!%p2311_p3)
}
 0x974   :  { %1387 = dma.vmem_to_hbm [thread:$0]  %s1385_s24, 128, %s2794_s5, [#allocation4]  }
 0x975   :  { %2327 = dma.done.wait [#allocation4], 128  }
 0x976   :  { %2328 = vsyncadd [#allocation4], 4294967168 }
 0x977   :  { %1391 = vsyncpa [#allocation3], 1 }
 0x978   :  { %1392 = vsyncpa [#allocation6], 1 }
 0x979   :  { %1393 = vsyncpa [#allocation9], 1 }
 0x97a   :  { %1394 = vsyncpa [#allocation12], 1 }
 0x97b   :  { %1395 = vsyncpa [#allocation15], 1 }
 0x97c   :  { %1396 = vsyncpa [#allocation18], 1 }
 0x97d   :  { %1397 = vsyncpa [#allocation4], 1 }

</bundles_post_ra>
